<compile_context>
chip_gen: v6e
topology: v6e:2x2x1
jax: 0.10.0
libtpu: 0.0.40
codegen_flags: <defaults>
</compile_context>

<pallas_src>
import jax
import jax.numpy as jnp
from jax.experimental import pallas as pl
from jax.experimental.pallas import tpu as pltpu


# ---------------------------------------------------------------------------
# Exact-ish GELU: erf via Abramowitz & Stegun 7.1.26 (|err| <= 1.5e-7).
# The 1/(1+p|x|) goes through the EUP approximate reciprocal; the resulting
# error is damped by gamma_2 = 1e-4 in the residual, far below tolerance.
# ---------------------------------------------------------------------------
def _erf(x):
    a1, a2, a3, a4, a5 = 0.254829592, -0.284496736, 1.421413741, -1.453152027, 1.061405429
    p = 0.3275911
    ax = jnp.abs(x)
    t = pl.reciprocal(1.0 + p * ax, approx=True)          # EUP slot
    poly = ((((a5 * t + a4) * t + a3) * t + a2) * t + a1) * t
    y = 1.0 - poly * jnp.exp(-ax * ax)                     # EUP slot
    return jnp.where(x >= 0, y, -y)


def _gelu(x):
    return 0.5 * x * (1.0 + _erf(x * 0.7071067811865476))


# ---------------------------------------------------------------------------
# Depthwise KxK conv (stride 1, zero pad (K-1)//2) on a (C, H*W) tile:
# channels on sublanes, pixels on lanes.  Each tap is a circular lane roll
# (XLU) + validity mask (VPU) + per-channel weight (lane broadcast).
# ---------------------------------------------------------------------------
def _dw_conv_flat(z, w_ref, ksize, W, HW, row_ok, col_ok):
    r = (ksize - 1) // 2
    acc = jnp.zeros_like(z)
    for i in range(ksize):
        for j in range(ksize):
            di, dj = i - r, j - r
            k = i * ksize + j
            if di == 0 and dj == 0:
                contrib = z
            else:
                s = di * W + dj                            # want out[p] = z[p + s]
                shifted = pltpu.roll(z, (-s) % HW, 1)      # circular lane shift
                contrib = jnp.where(row_ok[di] & col_ok[dj], shifted, 0.0)
            acc = acc + contrib * w_ref[:, k:k + 1]        # (C,1) lane-broadcast
    return acc


# ---------------------------------------------------------------------------
# Fused CBlock_ln kernel (one image per grid step).
# ---------------------------------------------------------------------------
def _make_kernel(H, W):
    HW = H * W

    def kernel(x_ref, idx_ref, w3_ref, peb_ref, m1_ref, c1_ref, w5_ref,
               m2_ref, c2_ref, mf1_ref, cf1_ref, mf2_ref, cf2_ref, out_ref):
        # positional indices (precomputed in the wrapper): (1, HW) int32 each
        hidx = idx_ref[0:1, :]
        widx = idx_ref[1:2, :]
        row_ok = {d: (hidx + d >= 0) & (hidx + d < H) for d in range(-2, 3)}
        col_ok = {d: (widx + d >= 0) & (widx + d < W) for d in range(-2, 3)}

        x = x_ref[0]                                       # (C, HW), lane-dense

        # y = x + pos_embed(x)            (depthwise 3x3 + per-channel bias)
        y = x + _dw_conv_flat(x, w3_ref, 3, W, HW, row_ok, col_ok) + peb_ref[...]

        # t = conv1(norm1(y))             (Aff norm1 folded into m1/c1)
        t = jnp.dot(m1_ref[...], y, preferred_element_type=jnp.float32) + c1_ref[...]

        # x2 = y + gamma_1 * conv2(attn(t))   (gamma_1 + attn bias folded)
        a = _dw_conv_flat(t, w5_ref, 5, W, HW, row_ok, col_ok)
        x2 = y + jnp.dot(m2_ref[...], a, preferred_element_type=jnp.float32) + c2_ref[...]

        # out = x2 + gamma_2 * fc2(gelu(fc1(norm2(x2))))  (norm2/gamma_2 folded)
        h = _gelu(jnp.dot(mf1_ref[...], x2, preferred_element_type=jnp.float32)
                  + cf1_ref[...])
        out = x2 + jnp.dot(mf2_ref[...], h, preferred_element_type=jnp.float32) + cf2_ref[...]

        out_ref[0] = out

    return kernel


# ---------------------------------------------------------------------------
# Wrapper: layout plumbing + one-time weight folding, single pallas_call.
# ---------------------------------------------------------------------------
def cblock_ln_forward(x_nchw, p):
    B, C, H, W = x_nchw.shape
    HW = H * W
    x = x_nchw.reshape(B, C, HW).astype(jnp.float32)       # free reshape (row-major)

    f32 = lambda a: jnp.asarray(a, jnp.float32)

    # depthwise tap weights, per-channel: (C, K*K)
    w3 = f32(p['pos_embed_w']).reshape(C, 9)
    pe_b = f32(p['pos_embed_b']).reshape(C, 1)
    w5 = f32(p['attn_w']).reshape(C, 25)

    # fold norm1 + conv1:  t = m1 @ y + c1
    W1 = f32(p['conv1_w']).reshape(C, C)
    m1 = W1 @ (f32(p['norm1_alpha']).reshape(C, 1) * f32(p['norm1_color']))
    c1 = W1 @ f32(p['norm1_beta']).reshape(C, 1) + f32(p['conv1_b']).reshape(C, 1)

    # fold gamma_1 + attn bias + conv2:  x2 = y + m2 @ dw5(t) + c2
    W2 = f32(p['conv2_w']).reshape(C, C)
    g1 = f32(p['gamma_1']).reshape(C, 1)
    m2 = g1 * W2
    c2 = g1 * (W2 @ f32(p['attn_b']).reshape(C, 1) + f32(p['conv2_b']).reshape(C, 1))

    # fold norm2 + fc1:  h = gelu(mf1 @ x2 + cf1)
    hidden = p['fc1_w'].shape[0]
    Wf1 = f32(p['fc1_w']).reshape(hidden, C)
    mf1 = Wf1 @ (f32(p['norm2_alpha']).reshape(C, 1) * f32(p['norm2_color']))
    cf1 = Wf1 @ f32(p['norm2_beta']).reshape(C, 1) + f32(p['fc1_b']).reshape(hidden, 1)

    # fold gamma_2 + fc2:  out = x2 + mf2 @ h + cf2
    Wf2 = f32(p['fc2_w']).reshape(C, hidden)
    g2 = f32(p['gamma_2']).reshape(C, 1)
    mf2 = g2 * Wf2
    cf2 = g2 * f32(p['fc2_b']).reshape(C, 1)

    # flat-pixel -> (row, col) index tables for the depthwise validity masks
    pos = jnp.arange(HW, dtype=jnp.int32)
    hw_idx = jnp.stack([pos // W, pos % W], axis=0)         # (2, HW) int32

    kernel = _make_kernel(H, W)

    def full(arr):
        nd = arr.ndim
        return pl.BlockSpec(arr.shape, lambda b, _nd=nd: (0,) * _nd)

    out = pl.pallas_call(
        kernel,
        out_shape=jax.ShapeDtypeStruct((B, C, HW), jnp.float32),
        grid=(B,),
        in_specs=[pl.BlockSpec((1, C, HW), lambda b: (b, 0, 0)),
                  full(hw_idx), full(w3), full(pe_b), full(m1), full(c1),
                  full(w5), full(m2), full(c2), full(mf1), full(cf1),
                  full(mf2), full(cf2)],
        out_specs=pl.BlockSpec((1, C, HW), lambda b: (b, 0, 0)),
        compiler_params=pltpu.CompilerParams(
            dimension_semantics=("parallel",),
            vmem_limit_bytes=32 * 1024 * 1024),
    )(x, hw_idx, w3, pe_b, m1, c1, w5, m2, c2, mf1, cf1, mf2, cf2)

    return out.reshape(B, C, H, W)


# ---------------------------------------------------------------------------
# Deterministic synthetic parameters (shapes per CBlock_ln.__init__)
# ---------------------------------------------------------------------------
def init_params(key, dim, mlp_ratio=4.0, init_values=1e-4):
    hidden = int(dim * mlp_ratio)
    ks = jax.random.split(key, 16)

    def nrm(k, shape, scale=0.1):
        return scale * jax.random.normal(k, shape, jnp.float32)

    return dict(
        pos_embed_w=nrm(ks[0], (dim, 1, 3, 3)),
        pos_embed_b=nrm(ks[1], (dim,)),
        norm1_alpha=jnp.ones((dim,), jnp.float32) + nrm(ks[2], (dim,), 0.05),
        norm1_beta=nrm(ks[3], (dim,), 0.05),
        norm1_color=jnp.eye(dim, dtype=jnp.float32) + nrm(ks[4], (dim, dim), 0.05),
        conv1_w=nrm(ks[5], (dim, dim, 1, 1)),
        conv1_b=nrm(ks[6], (dim,)),
        attn_w=nrm(ks[7], (dim, 1, 5, 5)),
        attn_b=nrm(ks[8], (dim,)),
        conv2_w=nrm(ks[9], (dim, dim, 1, 1)),
        conv2_b=nrm(ks[10], (dim,)),
        gamma_1=init_values * jnp.ones((dim,), jnp.float32),
        norm2_alpha=jnp.ones((dim,), jnp.float32) + nrm(ks[11], (dim,), 0.05),
        norm2_beta=nrm(ks[12], (dim,), 0.05),
        norm2_color=jnp.eye(dim, dtype=jnp.float32) + nrm(ks[13], (dim, dim), 0.05),
        fc1_w=nrm(ks[14], (hidden, dim, 1, 1)),
        fc1_b=jnp.zeros((hidden,), jnp.float32),
        fc2_w=nrm(ks[15], (dim, hidden, 1, 1)),
        fc2_b=jnp.zeros((dim,), jnp.float32),
        gamma_2=init_values * jnp.ones((dim,), jnp.float32),
    )


# ---------------------------------------------------------------------------
# Pure-JAX reference (verification only)
# ---------------------------------------------------------------------------
def ref_forward_nhwc(x, p):
    C = x.shape[-1]

    def dwconv(z, w_oihw, b, pad):
        w = jnp.transpose(w_oihw, (2, 3, 1, 0))   # HWIO, I=1, O=C
        out = jax.lax.conv_general_dilated(
            z, w, window_strides=(1, 1), padding=[(pad, pad), (pad, pad)],
            dimension_numbers=('NHWC', 'HWIO', 'NHWC'),
            feature_group_count=C)
        return out + b

    def conv1x1(z, w_oi, b):
        return jnp.einsum('bhwc,oc->bhwo', z, w_oi) + b

    def aff(z, color, alpha, beta):
        return jnp.einsum('bhwc,dc->bhwd', z, color) * alpha + beta

    y = x + dwconv(x, p['pos_embed_w'], p['pos_embed_b'], 1)
    n1 = aff(y, p['norm1_color'], p['norm1_alpha'], p['norm1_beta'])
    t = conv1x1(n1, p['conv1_w'].reshape(C, C), p['conv1_b'])
    a = dwconv(t, p['attn_w'], p['attn_b'], 2)
    a = conv1x1(a, p['conv2_w'].reshape(C, C), p['conv2_b'])
    y2 = y + p['gamma_1'] * a
    n2 = aff(y2, p['norm2_color'], p['norm2_alpha'], p['norm2_beta'])
    Hd = p['fc1_w'].shape[0]
    h = conv1x1(n2, p['fc1_w'].reshape(Hd, C), p['fc1_b'])
    h = jax.nn.gelu(h, approximate=False)
    m = conv1x1(h, p['fc2_w'].reshape(C, Hd), p['fc2_b'])
    return y2 + p['gamma_2'] * m


if __name__ == "__main__":
    key = jax.random.PRNGKey(0)
    kx, kp = jax.random.split(key)
    B, C, H, W = 2, 8, 16, 16            # NCHW, dim=8, mlp_hidden=32
    x = jax.random.normal(kx, (B, C, H, W), jnp.float32)
    params = init_params(kp, C)

    out = jax.jit(cblock_ln_forward)(x, params)
    out = jax.block_until_ready(out)

    # verify against pure-JAX reference
    ref = jnp.transpose(
        ref_forward_nhwc(jnp.transpose(x, (0, 2, 3, 1)), params), (0, 3, 1, 2))
    assert out.shape == x.shape
    max_err = float(jnp.max(jnp.abs(out - ref)))
    assert max_err < 1e-4, f"max abs err {max_err}"
    print("KERNEL_OK")
</pallas_src>

<mosaic_0001>
module attributes {stable_mosaic.version = 11 : i64} {
  func.func @kernel(%arg0: i32, %arg1: memref<1x8x256xf32, #tpu.memory_space<vmem>>, %arg2: memref<2x256xi32, #tpu.memory_space<vmem>>, %arg3: memref<8x9xf32, #tpu.memory_space<vmem>>, %arg4: memref<8x1xf32, #tpu.memory_space<vmem>>, %arg5: memref<8x8xf32, #tpu.memory_space<vmem>>, %arg6: memref<8x1xf32, #tpu.memory_space<vmem>>, %arg7: memref<8x25xf32, #tpu.memory_space<vmem>>, %arg8: memref<8x8xf32, #tpu.memory_space<vmem>>, %arg9: memref<8x1xf32, #tpu.memory_space<vmem>>, %arg10: memref<32x8xf32, #tpu.memory_space<vmem>>, %arg11: memref<32x1xf32, #tpu.memory_space<vmem>>, %arg12: memref<8x32xf32, #tpu.memory_space<vmem>>, %arg13: memref<8x1xf32, #tpu.memory_space<vmem>>, %arg14: memref<1x8x256xf32, #tpu.memory_space<vmem>>) attributes {dimension_semantics = [#tpu.dimension_semantics<parallel>], iteration_bounds = array<i64: 2>, scalar_prefetch = 0 : i64, scratch_operands = 0 : i64, tpu.core_type = #tpu.core_type<tc>, window_params = [{transform_indices = @transform_0, window_bounds = array<i64: 1, 8, 256>}, {pipeline_mode = #tpu.pipeline_mode<synchronous>, transform_indices = @transform_1, window_bounds = array<i64: 2, 256>}, {pipeline_mode = #tpu.pipeline_mode<synchronous>, transform_indices = @transform_2, window_bounds = array<i64: 8, 9>}, {pipeline_mode = #tpu.pipeline_mode<synchronous>, transform_indices = @transform_3, window_bounds = array<i64: 8, 1>}, {pipeline_mode = #tpu.pipeline_mode<synchronous>, transform_indices = @transform_4, window_bounds = array<i64: 8, 8>}, {pipeline_mode = #tpu.pipeline_mode<synchronous>, transform_indices = @transform_5, window_bounds = array<i64: 8, 1>}, {pipeline_mode = #tpu.pipeline_mode<synchronous>, transform_indices = @transform_6, window_bounds = array<i64: 8, 25>}, {pipeline_mode = #tpu.pipeline_mode<synchronous>, transform_indices = @transform_7, window_bounds = array<i64: 8, 8>}, {pipeline_mode = #tpu.pipeline_mode<synchronous>, transform_indices = @transform_8, window_bounds = array<i64: 8, 1>}, {pipeline_mode = #tpu.pipeline_mode<synchronous>, transform_indices = @transform_9, window_bounds = array<i64: 32, 8>}, {pipeline_mode = #tpu.pipeline_mode<synchronous>, transform_indices = @transform_10, window_bounds = array<i64: 32, 1>}, {pipeline_mode = #tpu.pipeline_mode<synchronous>, transform_indices = @transform_11, window_bounds = array<i64: 8, 32>}, {pipeline_mode = #tpu.pipeline_mode<synchronous>, transform_indices = @transform_12, window_bounds = array<i64: 8, 1>}, {transform_indices = @transform_13, window_bounds = array<i64: 1, 8, 256>}]} {
    %c0 = arith.constant 0 : index
    %c0_0 = arith.constant 0 : index
    %0 = vector.load %arg2[%c0, %c0_0] : memref<2x256xi32, #tpu.memory_space<vmem>>, vector<1x256xi32>
    %c1 = arith.constant 1 : index
    %c0_1 = arith.constant 0 : index
    %1 = vector.load %arg2[%c1, %c0_1] : memref<2x256xi32, #tpu.memory_space<vmem>>, vector<1x256xi32>
    %c-2_i32 = arith.constant -2 : i32
    %2 = vector.broadcast %c-2_i32 : i32 to vector<1x256xi32>
    %3 = arith.addi %0, %2 : vector<1x256xi32>
    %c0_i32 = arith.constant 0 : i32
    %4 = vector.broadcast %c0_i32 : i32 to vector<1x256xi32>
    %5 = arith.cmpi sge, %3, %4 : vector<1x256xi32>
    %c-2_i32_2 = arith.constant -2 : i32
    %6 = vector.broadcast %c-2_i32_2 : i32 to vector<1x256xi32>
    %7 = arith.addi %0, %6 : vector<1x256xi32>
    %c16_i32 = arith.constant 16 : i32
    %8 = vector.broadcast %c16_i32 : i32 to vector<1x256xi32>
    %9 = arith.cmpi slt, %7, %8 : vector<1x256xi32>
    %10 = arith.andi %5, %9 : vector<1x256xi1>
    %c-1_i32 = arith.constant -1 : i32
    %11 = vector.broadcast %c-1_i32 : i32 to vector<1x256xi32>
    %12 = arith.addi %0, %11 : vector<1x256xi32>
    %c0_i32_3 = arith.constant 0 : i32
    %13 = vector.broadcast %c0_i32_3 : i32 to vector<1x256xi32>
    %14 = arith.cmpi sge, %12, %13 : vector<1x256xi32>
    %c-1_i32_4 = arith.constant -1 : i32
    %15 = vector.broadcast %c-1_i32_4 : i32 to vector<1x256xi32>
    %16 = arith.addi %0, %15 : vector<1x256xi32>
    %c16_i32_5 = arith.constant 16 : i32
    %17 = vector.broadcast %c16_i32_5 : i32 to vector<1x256xi32>
    %18 = arith.cmpi slt, %16, %17 : vector<1x256xi32>
    %19 = arith.andi %14, %18 : vector<1x256xi1>
    %c0_i32_6 = arith.constant 0 : i32
    %20 = vector.broadcast %c0_i32_6 : i32 to vector<1x256xi32>
    %21 = arith.addi %0, %20 : vector<1x256xi32>
    %c0_i32_7 = arith.constant 0 : i32
    %22 = vector.broadcast %c0_i32_7 : i32 to vector<1x256xi32>
    %23 = arith.cmpi sge, %21, %22 : vector<1x256xi32>
    %c0_i32_8 = arith.constant 0 : i32
    %24 = vector.broadcast %c0_i32_8 : i32 to vector<1x256xi32>
    %25 = arith.addi %0, %24 : vector<1x256xi32>
    %c16_i32_9 = arith.constant 16 : i32
    %26 = vector.broadcast %c16_i32_9 : i32 to vector<1x256xi32>
    %27 = arith.cmpi slt, %25, %26 : vector<1x256xi32>
    %28 = arith.andi %23, %27 : vector<1x256xi1>
    %c1_i32 = arith.constant 1 : i32
    %29 = vector.broadcast %c1_i32 : i32 to vector<1x256xi32>
    %30 = arith.addi %0, %29 : vector<1x256xi32>
    %c0_i32_10 = arith.constant 0 : i32
    %31 = vector.broadcast %c0_i32_10 : i32 to vector<1x256xi32>
    %32 = arith.cmpi sge, %30, %31 : vector<1x256xi32>
    %c1_i32_11 = arith.constant 1 : i32
    %33 = vector.broadcast %c1_i32_11 : i32 to vector<1x256xi32>
    %34 = arith.addi %0, %33 : vector<1x256xi32>
    %c16_i32_12 = arith.constant 16 : i32
    %35 = vector.broadcast %c16_i32_12 : i32 to vector<1x256xi32>
    %36 = arith.cmpi slt, %34, %35 : vector<1x256xi32>
    %37 = arith.andi %32, %36 : vector<1x256xi1>
    %c2_i32 = arith.constant 2 : i32
    %38 = vector.broadcast %c2_i32 : i32 to vector<1x256xi32>
    %39 = arith.addi %0, %38 : vector<1x256xi32>
    %c0_i32_13 = arith.constant 0 : i32
    %40 = vector.broadcast %c0_i32_13 : i32 to vector<1x256xi32>
    %41 = arith.cmpi sge, %39, %40 : vector<1x256xi32>
    %c2_i32_14 = arith.constant 2 : i32
    %42 = vector.broadcast %c2_i32_14 : i32 to vector<1x256xi32>
    %43 = arith.addi %0, %42 : vector<1x256xi32>
    %c16_i32_15 = arith.constant 16 : i32
    %44 = vector.broadcast %c16_i32_15 : i32 to vector<1x256xi32>
    %45 = arith.cmpi slt, %43, %44 : vector<1x256xi32>
    %46 = arith.andi %41, %45 : vector<1x256xi1>
    %c-2_i32_16 = arith.constant -2 : i32
    %47 = vector.broadcast %c-2_i32_16 : i32 to vector<1x256xi32>
    %48 = arith.addi %1, %47 : vector<1x256xi32>
    %c0_i32_17 = arith.constant 0 : i32
    %49 = vector.broadcast %c0_i32_17 : i32 to vector<1x256xi32>
    %50 = arith.cmpi sge, %48, %49 : vector<1x256xi32>
    %c-2_i32_18 = arith.constant -2 : i32
    %51 = vector.broadcast %c-2_i32_18 : i32 to vector<1x256xi32>
    %52 = arith.addi %1, %51 : vector<1x256xi32>
    %c16_i32_19 = arith.constant 16 : i32
    %53 = vector.broadcast %c16_i32_19 : i32 to vector<1x256xi32>
    %54 = arith.cmpi slt, %52, %53 : vector<1x256xi32>
    %55 = arith.andi %50, %54 : vector<1x256xi1>
    %c-1_i32_20 = arith.constant -1 : i32
    %56 = vector.broadcast %c-1_i32_20 : i32 to vector<1x256xi32>
    %57 = arith.addi %1, %56 : vector<1x256xi32>
    %c0_i32_21 = arith.constant 0 : i32
    %58 = vector.broadcast %c0_i32_21 : i32 to vector<1x256xi32>
    %59 = arith.cmpi sge, %57, %58 : vector<1x256xi32>
    %c-1_i32_22 = arith.constant -1 : i32
    %60 = vector.broadcast %c-1_i32_22 : i32 to vector<1x256xi32>
    %61 = arith.addi %1, %60 : vector<1x256xi32>
    %c16_i32_23 = arith.constant 16 : i32
    %62 = vector.broadcast %c16_i32_23 : i32 to vector<1x256xi32>
    %63 = arith.cmpi slt, %61, %62 : vector<1x256xi32>
    %64 = arith.andi %59, %63 : vector<1x256xi1>
    %c0_i32_24 = arith.constant 0 : i32
    %65 = vector.broadcast %c0_i32_24 : i32 to vector<1x256xi32>
    %66 = arith.addi %1, %65 : vector<1x256xi32>
    %c0_i32_25 = arith.constant 0 : i32
    %67 = vector.broadcast %c0_i32_25 : i32 to vector<1x256xi32>
    %68 = arith.cmpi sge, %66, %67 : vector<1x256xi32>
    %c0_i32_26 = arith.constant 0 : i32
    %69 = vector.broadcast %c0_i32_26 : i32 to vector<1x256xi32>
    %70 = arith.addi %1, %69 : vector<1x256xi32>
    %c16_i32_27 = arith.constant 16 : i32
    %71 = vector.broadcast %c16_i32_27 : i32 to vector<1x256xi32>
    %72 = arith.cmpi slt, %70, %71 : vector<1x256xi32>
    %73 = arith.andi %68, %72 : vector<1x256xi1>
    %c1_i32_28 = arith.constant 1 : i32
    %74 = vector.broadcast %c1_i32_28 : i32 to vector<1x256xi32>
    %75 = arith.addi %1, %74 : vector<1x256xi32>
    %c0_i32_29 = arith.constant 0 : i32
    %76 = vector.broadcast %c0_i32_29 : i32 to vector<1x256xi32>
    %77 = arith.cmpi sge, %75, %76 : vector<1x256xi32>
    %c1_i32_30 = arith.constant 1 : i32
    %78 = vector.broadcast %c1_i32_30 : i32 to vector<1x256xi32>
    %79 = arith.addi %1, %78 : vector<1x256xi32>
    %c16_i32_31 = arith.constant 16 : i32
    %80 = vector.broadcast %c16_i32_31 : i32 to vector<1x256xi32>
    %81 = arith.cmpi slt, %79, %80 : vector<1x256xi32>
    %82 = arith.andi %77, %81 : vector<1x256xi1>
    %c2_i32_32 = arith.constant 2 : i32
    %83 = vector.broadcast %c2_i32_32 : i32 to vector<1x256xi32>
    %84 = arith.addi %1, %83 : vector<1x256xi32>
    %c0_i32_33 = arith.constant 0 : i32
    %85 = vector.broadcast %c0_i32_33 : i32 to vector<1x256xi32>
    %86 = arith.cmpi sge, %84, %85 : vector<1x256xi32>
    %c2_i32_34 = arith.constant 2 : i32
    %87 = vector.broadcast %c2_i32_34 : i32 to vector<1x256xi32>
    %88 = arith.addi %1, %87 : vector<1x256xi32>
    %c16_i32_35 = arith.constant 16 : i32
    %89 = vector.broadcast %c16_i32_35 : i32 to vector<1x256xi32>
    %90 = arith.cmpi slt, %88, %89 : vector<1x256xi32>
    %91 = arith.andi %86, %90 : vector<1x256xi1>
    %c0_36 = arith.constant 0 : index
    %c0_37 = arith.constant 0 : index
    %c0_38 = arith.constant 0 : index
    %92 = vector.load %arg1[%c0_36, %c0_37, %c0_38] : memref<1x8x256xf32, #tpu.memory_space<vmem>>, vector<1x8x256xf32>
    %93 = vector.shape_cast %92 : vector<1x8x256xf32> to vector<8x256xf32>
    %cst = arith.constant 0.000000e+00 : f32
    %94 = vector.broadcast %cst : f32 to vector<8x256xf32>
    %c17_i32 = arith.constant 17 : i32
    %95 = tpu.dynamic_rotate %93 by %c17_i32 dim 1 : vector<8x256xf32>, i32 -> vector<8x256xf32>
    %96 = arith.andi %19, %64 : vector<1x256xi1>
    %cst_39 = arith.constant 0.000000e+00 : f32
    %97 = vector.shape_cast %96 : vector<1x256xi1> to vector<1x256xi1>
    %98 = vector.broadcast %97 : vector<1x256xi1> to vector<8x256xi1>
    %99 = vector.broadcast %cst_39 : f32 to vector<8x256xf32>
    %100 = arith.select %98, %95, %99 : vector<8x256xi1>, vector<8x256xf32>
    %c0_40 = arith.constant 0 : index
    %c0_41 = arith.constant 0 : index
    %101 = vector.load %arg3[%c0_40, %c0_41] : memref<8x9xf32, #tpu.memory_space<vmem>>, vector<8x1xf32>
    %102 = vector.broadcast %101 : vector<8x1xf32> to vector<8x256xf32>
    %103 = arith.mulf %100, %102 : vector<8x256xf32>
    %104 = arith.addf %94, %103 : vector<8x256xf32>
    %c16_i32_42 = arith.constant 16 : i32
    %105 = tpu.dynamic_rotate %93 by %c16_i32_42 dim 1 : vector<8x256xf32>, i32 -> vector<8x256xf32>
    %106 = arith.andi %19, %73 : vector<1x256xi1>
    %cst_43 = arith.constant 0.000000e+00 : f32
    %107 = vector.shape_cast %106 : vector<1x256xi1> to vector<1x256xi1>
    %108 = vector.broadcast %107 : vector<1x256xi1> to vector<8x256xi1>
    %109 = vector.broadcast %cst_43 : f32 to vector<8x256xf32>
    %110 = arith.select %108, %105, %109 : vector<8x256xi1>, vector<8x256xf32>
    %c0_44 = arith.constant 0 : index
    %c1_45 = arith.constant 1 : index
    %111 = vector.load %arg3[%c0_44, %c1_45] : memref<8x9xf32, #tpu.memory_space<vmem>>, vector<8x1xf32>
    %112 = vector.broadcast %111 : vector<8x1xf32> to vector<8x256xf32>
    %113 = arith.mulf %110, %112 : vector<8x256xf32>
    %114 = arith.addf %104, %113 : vector<8x256xf32>
    %c15_i32 = arith.constant 15 : i32
    %115 = tpu.dynamic_rotate %93 by %c15_i32 dim 1 : vector<8x256xf32>, i32 -> vector<8x256xf32>
    %116 = arith.andi %19, %82 : vector<1x256xi1>
    %cst_46 = arith.constant 0.000000e+00 : f32
    %117 = vector.shape_cast %116 : vector<1x256xi1> to vector<1x256xi1>
    %118 = vector.broadcast %117 : vector<1x256xi1> to vector<8x256xi1>
    %119 = vector.broadcast %cst_46 : f32 to vector<8x256xf32>
    %120 = arith.select %118, %115, %119 : vector<8x256xi1>, vector<8x256xf32>
    %c0_47 = arith.constant 0 : index
    %c2 = arith.constant 2 : index
    %121 = vector.load %arg3[%c0_47, %c2] : memref<8x9xf32, #tpu.memory_space<vmem>>, vector<8x1xf32>
    %122 = vector.broadcast %121 : vector<8x1xf32> to vector<8x256xf32>
    %123 = arith.mulf %120, %122 : vector<8x256xf32>
    %124 = arith.addf %114, %123 : vector<8x256xf32>
    %c1_i32_48 = arith.constant 1 : i32
    %125 = tpu.dynamic_rotate %93 by %c1_i32_48 dim 1 : vector<8x256xf32>, i32 -> vector<8x256xf32>
    %126 = arith.andi %28, %64 : vector<1x256xi1>
    %cst_49 = arith.constant 0.000000e+00 : f32
    %127 = vector.shape_cast %126 : vector<1x256xi1> to vector<1x256xi1>
    %128 = vector.broadcast %127 : vector<1x256xi1> to vector<8x256xi1>
    %129 = vector.broadcast %cst_49 : f32 to vector<8x256xf32>
    %130 = arith.select %128, %125, %129 : vector<8x256xi1>, vector<8x256xf32>
    %c0_50 = arith.constant 0 : index
    %c3 = arith.constant 3 : index
    %131 = vector.load %arg3[%c0_50, %c3] : memref<8x9xf32, #tpu.memory_space<vmem>>, vector<8x1xf32>
    %132 = vector.broadcast %131 : vector<8x1xf32> to vector<8x256xf32>
    %133 = arith.mulf %130, %132 : vector<8x256xf32>
    %134 = arith.addf %124, %133 : vector<8x256xf32>
    %c0_51 = arith.constant 0 : index
    %c4 = arith.constant 4 : index
    %135 = vector.load %arg3[%c0_51, %c4] : memref<8x9xf32, #tpu.memory_space<vmem>>, vector<8x1xf32>
    %136 = vector.broadcast %135 : vector<8x1xf32> to vector<8x256xf32>
    %137 = arith.mulf %93, %136 : vector<8x256xf32>
    %138 = arith.addf %134, %137 : vector<8x256xf32>
    %c255_i32 = arith.constant 255 : i32
    %139 = tpu.dynamic_rotate %93 by %c255_i32 dim 1 : vector<8x256xf32>, i32 -> vector<8x256xf32>
    %140 = arith.andi %28, %82 : vector<1x256xi1>
    %cst_52 = arith.constant 0.000000e+00 : f32
    %141 = vector.shape_cast %140 : vector<1x256xi1> to vector<1x256xi1>
    %142 = vector.broadcast %141 : vector<1x256xi1> to vector<8x256xi1>
    %143 = vector.broadcast %cst_52 : f32 to vector<8x256xf32>
    %144 = arith.select %142, %139, %143 : vector<8x256xi1>, vector<8x256xf32>
    %c0_53 = arith.constant 0 : index
    %c5 = arith.constant 5 : index
    %145 = vector.load %arg3[%c0_53, %c5] : memref<8x9xf32, #tpu.memory_space<vmem>>, vector<8x1xf32>
    %146 = vector.broadcast %145 : vector<8x1xf32> to vector<8x256xf32>
    %147 = arith.mulf %144, %146 : vector<8x256xf32>
    %148 = arith.addf %138, %147 : vector<8x256xf32>
    %c241_i32 = arith.constant 241 : i32
    %149 = tpu.dynamic_rotate %93 by %c241_i32 dim 1 : vector<8x256xf32>, i32 -> vector<8x256xf32>
    %150 = arith.andi %37, %64 : vector<1x256xi1>
    %cst_54 = arith.constant 0.000000e+00 : f32
    %151 = vector.shape_cast %150 : vector<1x256xi1> to vector<1x256xi1>
    %152 = vector.broadcast %151 : vector<1x256xi1> to vector<8x256xi1>
    %153 = vector.broadcast %cst_54 : f32 to vector<8x256xf32>
    %154 = arith.select %152, %149, %153 : vector<8x256xi1>, vector<8x256xf32>
    %c0_55 = arith.constant 0 : index
    %c6 = arith.constant 6 : index
    %155 = vector.load %arg3[%c0_55, %c6] : memref<8x9xf32, #tpu.memory_space<vmem>>, vector<8x1xf32>
    %156 = vector.broadcast %155 : vector<8x1xf32> to vector<8x256xf32>
    %157 = arith.mulf %154, %156 : vector<8x256xf32>
    %158 = arith.addf %148, %157 : vector<8x256xf32>
    %c240_i32 = arith.constant 240 : i32
    %159 = tpu.dynamic_rotate %93 by %c240_i32 dim 1 : vector<8x256xf32>, i32 -> vector<8x256xf32>
    %160 = arith.andi %37, %73 : vector<1x256xi1>
    %cst_56 = arith.constant 0.000000e+00 : f32
    %161 = vector.shape_cast %160 : vector<1x256xi1> to vector<1x256xi1>
    %162 = vector.broadcast %161 : vector<1x256xi1> to vector<8x256xi1>
    %163 = vector.broadcast %cst_56 : f32 to vector<8x256xf32>
    %164 = arith.select %162, %159, %163 : vector<8x256xi1>, vector<8x256xf32>
    %c0_57 = arith.constant 0 : index
    %c7 = arith.constant 7 : index
    %165 = vector.load %arg3[%c0_57, %c7] : memref<8x9xf32, #tpu.memory_space<vmem>>, vector<8x1xf32>
    %166 = vector.broadcast %165 : vector<8x1xf32> to vector<8x256xf32>
    %167 = arith.mulf %164, %166 : vector<8x256xf32>
    %168 = arith.addf %158, %167 : vector<8x256xf32>
    %c239_i32 = arith.constant 239 : i32
    %169 = tpu.dynamic_rotate %93 by %c239_i32 dim 1 : vector<8x256xf32>, i32 -> vector<8x256xf32>
    %170 = arith.andi %37, %82 : vector<1x256xi1>
    %cst_58 = arith.constant 0.000000e+00 : f32
    %171 = vector.shape_cast %170 : vector<1x256xi1> to vector<1x256xi1>
    %172 = vector.broadcast %171 : vector<1x256xi1> to vector<8x256xi1>
    %173 = vector.broadcast %cst_58 : f32 to vector<8x256xf32>
    %174 = arith.select %172, %169, %173 : vector<8x256xi1>, vector<8x256xf32>
    %c0_59 = arith.constant 0 : index
    %c8 = arith.constant 8 : index
    %175 = vector.load %arg3[%c0_59, %c8] : memref<8x9xf32, #tpu.memory_space<vmem>>, vector<8x1xf32>
    %176 = vector.broadcast %175 : vector<8x1xf32> to vector<8x256xf32>
    %177 = arith.mulf %174, %176 : vector<8x256xf32>
    %178 = arith.addf %168, %177 : vector<8x256xf32>
    %179 = arith.addf %93, %178 : vector<8x256xf32>
    %c0_60 = arith.constant 0 : index
    %c0_61 = arith.constant 0 : index
    %180 = vector.load %arg4[%c0_60, %c0_61] : memref<8x1xf32, #tpu.memory_space<vmem>>, vector<8x1xf32>
    %181 = vector.broadcast %180 : vector<8x1xf32> to vector<8x256xf32>
    %182 = arith.addf %179, %181 : vector<8x256xf32>
    %c0_62 = arith.constant 0 : index
    %c0_63 = arith.constant 0 : index
    %183 = vector.load %arg5[%c0_62, %c0_63] : memref<8x8xf32, #tpu.memory_space<vmem>>, vector<8x8xf32>
    %cst_64 = arith.constant dense<0.000000e+00> : vector<8x256xf32>
    %184 = tpu.matmul %183, %182, %cst_64 {dimension_numbers = #tpu.dot_dimension_numbers<[1], [0], [0], [1], [0, 0, 1, 1], [], []>} : vector<8x8xf32>, vector<8x256xf32>, vector<8x256xf32> -> vector<8x256xf32>
    %c0_65 = arith.constant 0 : index
    %c0_66 = arith.constant 0 : index
    %185 = vector.load %arg6[%c0_65, %c0_66] : memref<8x1xf32, #tpu.memory_space<vmem>>, vector<8x1xf32>
    %186 = vector.broadcast %185 : vector<8x1xf32> to vector<8x256xf32>
    %187 = arith.addf %184, %186 : vector<8x256xf32>
    %cst_67 = arith.constant 0.000000e+00 : f32
    %188 = vector.broadcast %cst_67 : f32 to vector<8x256xf32>
    %c34_i32 = arith.constant 34 : i32
    %189 = tpu.dynamic_rotate %187 by %c34_i32 dim 1 : vector<8x256xf32>, i32 -> vector<8x256xf32>
    %190 = arith.andi %10, %55 : vector<1x256xi1>
    %cst_68 = arith.constant 0.000000e+00 : f32
    %191 = vector.shape_cast %190 : vector<1x256xi1> to vector<1x256xi1>
    %192 = vector.broadcast %191 : vector<1x256xi1> to vector<8x256xi1>
    %193 = vector.broadcast %cst_68 : f32 to vector<8x256xf32>
    %194 = arith.select %192, %189, %193 : vector<8x256xi1>, vector<8x256xf32>
    %c0_69 = arith.constant 0 : index
    %c0_70 = arith.constant 0 : index
    %195 = vector.load %arg7[%c0_69, %c0_70] : memref<8x25xf32, #tpu.memory_space<vmem>>, vector<8x1xf32>
    %196 = vector.broadcast %195 : vector<8x1xf32> to vector<8x256xf32>
    %197 = arith.mulf %194, %196 : vector<8x256xf32>
    %198 = arith.addf %188, %197 : vector<8x256xf32>
    %c33_i32 = arith.constant 33 : i32
    %199 = tpu.dynamic_rotate %187 by %c33_i32 dim 1 : vector<8x256xf32>, i32 -> vector<8x256xf32>
    %200 = arith.andi %10, %64 : vector<1x256xi1>
    %cst_71 = arith.constant 0.000000e+00 : f32
    %201 = vector.shape_cast %200 : vector<1x256xi1> to vector<1x256xi1>
    %202 = vector.broadcast %201 : vector<1x256xi1> to vector<8x256xi1>
    %203 = vector.broadcast %cst_71 : f32 to vector<8x256xf32>
    %204 = arith.select %202, %199, %203 : vector<8x256xi1>, vector<8x256xf32>
    %c0_72 = arith.constant 0 : index
    %c1_73 = arith.constant 1 : index
    %205 = vector.load %arg7[%c0_72, %c1_73] : memref<8x25xf32, #tpu.memory_space<vmem>>, vector<8x1xf32>
    %206 = vector.broadcast %205 : vector<8x1xf32> to vector<8x256xf32>
    %207 = arith.mulf %204, %206 : vector<8x256xf32>
    %208 = arith.addf %198, %207 : vector<8x256xf32>
    %c32_i32 = arith.constant 32 : i32
    %209 = tpu.dynamic_rotate %187 by %c32_i32 dim 1 : vector<8x256xf32>, i32 -> vector<8x256xf32>
    %210 = arith.andi %10, %73 : vector<1x256xi1>
    %cst_74 = arith.constant 0.000000e+00 : f32
    %211 = vector.shape_cast %210 : vector<1x256xi1> to vector<1x256xi1>
    %212 = vector.broadcast %211 : vector<1x256xi1> to vector<8x256xi1>
    %213 = vector.broadcast %cst_74 : f32 to vector<8x256xf32>
    %214 = arith.select %212, %209, %213 : vector<8x256xi1>, vector<8x256xf32>
    %c0_75 = arith.constant 0 : index
    %c2_76 = arith.constant 2 : index
    %215 = vector.load %arg7[%c0_75, %c2_76] : memref<8x25xf32, #tpu.memory_space<vmem>>, vector<8x1xf32>
    %216 = vector.broadcast %215 : vector<8x1xf32> to vector<8x256xf32>
    %217 = arith.mulf %214, %216 : vector<8x256xf32>
    %218 = arith.addf %208, %217 : vector<8x256xf32>
    %c31_i32 = arith.constant 31 : i32
    %219 = tpu.dynamic_rotate %187 by %c31_i32 dim 1 : vector<8x256xf32>, i32 -> vector<8x256xf32>
    %220 = arith.andi %10, %82 : vector<1x256xi1>
    %cst_77 = arith.constant 0.000000e+00 : f32
    %221 = vector.shape_cast %220 : vector<1x256xi1> to vector<1x256xi1>
    %222 = vector.broadcast %221 : vector<1x256xi1> to vector<8x256xi1>
    %223 = vector.broadcast %cst_77 : f32 to vector<8x256xf32>
    %224 = arith.select %222, %219, %223 : vector<8x256xi1>, vector<8x256xf32>
    %c0_78 = arith.constant 0 : index
    %c3_79 = arith.constant 3 : index
    %225 = vector.load %arg7[%c0_78, %c3_79] : memref<8x25xf32, #tpu.memory_space<vmem>>, vector<8x1xf32>
    %226 = vector.broadcast %225 : vector<8x1xf32> to vector<8x256xf32>
    %227 = arith.mulf %224, %226 : vector<8x256xf32>
    %228 = arith.addf %218, %227 : vector<8x256xf32>
    %c30_i32 = arith.constant 30 : i32
    %229 = tpu.dynamic_rotate %187 by %c30_i32 dim 1 : vector<8x256xf32>, i32 -> vector<8x256xf32>
    %230 = arith.andi %10, %91 : vector<1x256xi1>
    %cst_80 = arith.constant 0.000000e+00 : f32
    %231 = vector.shape_cast %230 : vector<1x256xi1> to vector<1x256xi1>
    %232 = vector.broadcast %231 : vector<1x256xi1> to vector<8x256xi1>
    %233 = vector.broadcast %cst_80 : f32 to vector<8x256xf32>
    %234 = arith.select %232, %229, %233 : vector<8x256xi1>, vector<8x256xf32>
    %c0_81 = arith.constant 0 : index
    %c4_82 = arith.constant 4 : index
    %235 = vector.load %arg7[%c0_81, %c4_82] : memref<8x25xf32, #tpu.memory_space<vmem>>, vector<8x1xf32>
    %236 = vector.broadcast %235 : vector<8x1xf32> to vector<8x256xf32>
    %237 = arith.mulf %234, %236 : vector<8x256xf32>
    %238 = arith.addf %228, %237 : vector<8x256xf32>
    %c18_i32 = arith.constant 18 : i32
    %239 = tpu.dynamic_rotate %187 by %c18_i32 dim 1 : vector<8x256xf32>, i32 -> vector<8x256xf32>
    %240 = arith.andi %19, %55 : vector<1x256xi1>
    %cst_83 = arith.constant 0.000000e+00 : f32
    %241 = vector.shape_cast %240 : vector<1x256xi1> to vector<1x256xi1>
    %242 = vector.broadcast %241 : vector<1x256xi1> to vector<8x256xi1>
    %243 = vector.broadcast %cst_83 : f32 to vector<8x256xf32>
    %244 = arith.select %242, %239, %243 : vector<8x256xi1>, vector<8x256xf32>
    %c0_84 = arith.constant 0 : index
    %c5_85 = arith.constant 5 : index
    %245 = vector.load %arg7[%c0_84, %c5_85] : memref<8x25xf32, #tpu.memory_space<vmem>>, vector<8x1xf32>
    %246 = vector.broadcast %245 : vector<8x1xf32> to vector<8x256xf32>
    %247 = arith.mulf %244, %246 : vector<8x256xf32>
    %248 = arith.addf %238, %247 : vector<8x256xf32>
    %c17_i32_86 = arith.constant 17 : i32
    %249 = tpu.dynamic_rotate %187 by %c17_i32_86 dim 1 : vector<8x256xf32>, i32 -> vector<8x256xf32>
    %250 = arith.andi %19, %64 : vector<1x256xi1>
    %cst_87 = arith.constant 0.000000e+00 : f32
    %251 = vector.shape_cast %250 : vector<1x256xi1> to vector<1x256xi1>
    %252 = vector.broadcast %251 : vector<1x256xi1> to vector<8x256xi1>
    %253 = vector.broadcast %cst_87 : f32 to vector<8x256xf32>
    %254 = arith.select %252, %249, %253 : vector<8x256xi1>, vector<8x256xf32>
    %c0_88 = arith.constant 0 : index
    %c6_89 = arith.constant 6 : index
    %255 = vector.load %arg7[%c0_88, %c6_89] : memref<8x25xf32, #tpu.memory_space<vmem>>, vector<8x1xf32>
    %256 = vector.broadcast %255 : vector<8x1xf32> to vector<8x256xf32>
    %257 = arith.mulf %254, %256 : vector<8x256xf32>
    %258 = arith.addf %248, %257 : vector<8x256xf32>
    %c16_i32_90 = arith.constant 16 : i32
    %259 = tpu.dynamic_rotate %187 by %c16_i32_90 dim 1 : vector<8x256xf32>, i32 -> vector<8x256xf32>
    %260 = arith.andi %19, %73 : vector<1x256xi1>
    %cst_91 = arith.constant 0.000000e+00 : f32
    %261 = vector.shape_cast %260 : vector<1x256xi1> to vector<1x256xi1>
    %262 = vector.broadcast %261 : vector<1x256xi1> to vector<8x256xi1>
    %263 = vector.broadcast %cst_91 : f32 to vector<8x256xf32>
    %264 = arith.select %262, %259, %263 : vector<8x256xi1>, vector<8x256xf32>
    %c0_92 = arith.constant 0 : index
    %c7_93 = arith.constant 7 : index
    %265 = vector.load %arg7[%c0_92, %c7_93] : memref<8x25xf32, #tpu.memory_space<vmem>>, vector<8x1xf32>
    %266 = vector.broadcast %265 : vector<8x1xf32> to vector<8x256xf32>
    %267 = arith.mulf %264, %266 : vector<8x256xf32>
    %268 = arith.addf %258, %267 : vector<8x256xf32>
    %c15_i32_94 = arith.constant 15 : i32
    %269 = tpu.dynamic_rotate %187 by %c15_i32_94 dim 1 : vector<8x256xf32>, i32 -> vector<8x256xf32>
    %270 = arith.andi %19, %82 : vector<1x256xi1>
    %cst_95 = arith.constant 0.000000e+00 : f32
    %271 = vector.shape_cast %270 : vector<1x256xi1> to vector<1x256xi1>
    %272 = vector.broadcast %271 : vector<1x256xi1> to vector<8x256xi1>
    %273 = vector.broadcast %cst_95 : f32 to vector<8x256xf32>
    %274 = arith.select %272, %269, %273 : vector<8x256xi1>, vector<8x256xf32>
    %c0_96 = arith.constant 0 : index
    %c8_97 = arith.constant 8 : index
    %275 = vector.load %arg7[%c0_96, %c8_97] : memref<8x25xf32, #tpu.memory_space<vmem>>, vector<8x1xf32>
    %276 = vector.broadcast %275 : vector<8x1xf32> to vector<8x256xf32>
    %277 = arith.mulf %274, %276 : vector<8x256xf32>
    %278 = arith.addf %268, %277 : vector<8x256xf32>
    %c14_i32 = arith.constant 14 : i32
    %279 = tpu.dynamic_rotate %187 by %c14_i32 dim 1 : vector<8x256xf32>, i32 -> vector<8x256xf32>
    %280 = arith.andi %19, %91 : vector<1x256xi1>
    %cst_98 = arith.constant 0.000000e+00 : f32
    %281 = vector.shape_cast %280 : vector<1x256xi1> to vector<1x256xi1>
    %282 = vector.broadcast %281 : vector<1x256xi1> to vector<8x256xi1>
    %283 = vector.broadcast %cst_98 : f32 to vector<8x256xf32>
    %284 = arith.select %282, %279, %283 : vector<8x256xi1>, vector<8x256xf32>
    %c0_99 = arith.constant 0 : index
    %c9 = arith.constant 9 : index
    %285 = vector.load %arg7[%c0_99, %c9] : memref<8x25xf32, #tpu.memory_space<vmem>>, vector<8x1xf32>
    %286 = vector.broadcast %285 : vector<8x1xf32> to vector<8x256xf32>
    %287 = arith.mulf %284, %286 : vector<8x256xf32>
    %288 = arith.addf %278, %287 : vector<8x256xf32>
    %c2_i32_100 = arith.constant 2 : i32
    %289 = tpu.dynamic_rotate %187 by %c2_i32_100 dim 1 : vector<8x256xf32>, i32 -> vector<8x256xf32>
    %290 = arith.andi %28, %55 : vector<1x256xi1>
    %cst_101 = arith.constant 0.000000e+00 : f32
    %291 = vector.shape_cast %290 : vector<1x256xi1> to vector<1x256xi1>
    %292 = vector.broadcast %291 : vector<1x256xi1> to vector<8x256xi1>
    %293 = vector.broadcast %cst_101 : f32 to vector<8x256xf32>
    %294 = arith.select %292, %289, %293 : vector<8x256xi1>, vector<8x256xf32>
    %c0_102 = arith.constant 0 : index
    %c10 = arith.constant 10 : index
    %295 = vector.load %arg7[%c0_102, %c10] : memref<8x25xf32, #tpu.memory_space<vmem>>, vector<8x1xf32>
    %296 = vector.broadcast %295 : vector<8x1xf32> to vector<8x256xf32>
    %297 = arith.mulf %294, %296 : vector<8x256xf32>
    %298 = arith.addf %288, %297 : vector<8x256xf32>
    %c1_i32_103 = arith.constant 1 : i32
    %299 = tpu.dynamic_rotate %187 by %c1_i32_103 dim 1 : vector<8x256xf32>, i32 -> vector<8x256xf32>
    %300 = arith.andi %28, %64 : vector<1x256xi1>
    %cst_104 = arith.constant 0.000000e+00 : f32
    %301 = vector.shape_cast %300 : vector<1x256xi1> to vector<1x256xi1>
    %302 = vector.broadcast %301 : vector<1x256xi1> to vector<8x256xi1>
    %303 = vector.broadcast %cst_104 : f32 to vector<8x256xf32>
    %304 = arith.select %302, %299, %303 : vector<8x256xi1>, vector<8x256xf32>
    %c0_105 = arith.constant 0 : index
    %c11 = arith.constant 11 : index
    %305 = vector.load %arg7[%c0_105, %c11] : memref<8x25xf32, #tpu.memory_space<vmem>>, vector<8x1xf32>
    %306 = vector.broadcast %305 : vector<8x1xf32> to vector<8x256xf32>
    %307 = arith.mulf %304, %306 : vector<8x256xf32>
    %308 = arith.addf %298, %307 : vector<8x256xf32>
    %c0_106 = arith.constant 0 : index
    %c12 = arith.constant 12 : index
    %309 = vector.load %arg7[%c0_106, %c12] : memref<8x25xf32, #tpu.memory_space<vmem>>, vector<8x1xf32>
    %310 = vector.broadcast %309 : vector<8x1xf32> to vector<8x256xf32>
    %311 = arith.mulf %187, %310 : vector<8x256xf32>
    %312 = arith.addf %308, %311 : vector<8x256xf32>
    %c255_i32_107 = arith.constant 255 : i32
    %313 = tpu.dynamic_rotate %187 by %c255_i32_107 dim 1 : vector<8x256xf32>, i32 -> vector<8x256xf32>
    %314 = arith.andi %28, %82 : vector<1x256xi1>
    %cst_108 = arith.constant 0.000000e+00 : f32
    %315 = vector.shape_cast %314 : vector<1x256xi1> to vector<1x256xi1>
    %316 = vector.broadcast %315 : vector<1x256xi1> to vector<8x256xi1>
    %317 = vector.broadcast %cst_108 : f32 to vector<8x256xf32>
    %318 = arith.select %316, %313, %317 : vector<8x256xi1>, vector<8x256xf32>
    %c0_109 = arith.constant 0 : index
    %c13 = arith.constant 13 : index
    %319 = vector.load %arg7[%c0_109, %c13] : memref<8x25xf32, #tpu.memory_space<vmem>>, vector<8x1xf32>
    %320 = vector.broadcast %319 : vector<8x1xf32> to vector<8x256xf32>
    %321 = arith.mulf %318, %320 : vector<8x256xf32>
    %322 = arith.addf %312, %321 : vector<8x256xf32>
    %c254_i32 = arith.constant 254 : i32
    %323 = tpu.dynamic_rotate %187 by %c254_i32 dim 1 : vector<8x256xf32>, i32 -> vector<8x256xf32>
    %324 = arith.andi %28, %91 : vector<1x256xi1>
    %cst_110 = arith.constant 0.000000e+00 : f32
    %325 = vector.shape_cast %324 : vector<1x256xi1> to vector<1x256xi1>
    %326 = vector.broadcast %325 : vector<1x256xi1> to vector<8x256xi1>
    %327 = vector.broadcast %cst_110 : f32 to vector<8x256xf32>
    %328 = arith.select %326, %323, %327 : vector<8x256xi1>, vector<8x256xf32>
    %c0_111 = arith.constant 0 : index
    %c14 = arith.constant 14 : index
    %329 = vector.load %arg7[%c0_111, %c14] : memref<8x25xf32, #tpu.memory_space<vmem>>, vector<8x1xf32>
    %330 = vector.broadcast %329 : vector<8x1xf32> to vector<8x256xf32>
    %331 = arith.mulf %328, %330 : vector<8x256xf32>
    %332 = arith.addf %322, %331 : vector<8x256xf32>
    %c242_i32 = arith.constant 242 : i32
    %333 = tpu.dynamic_rotate %187 by %c242_i32 dim 1 : vector<8x256xf32>, i32 -> vector<8x256xf32>
    %334 = arith.andi %37, %55 : vector<1x256xi1>
    %cst_112 = arith.constant 0.000000e+00 : f32
    %335 = vector.shape_cast %334 : vector<1x256xi1> to vector<1x256xi1>
    %336 = vector.broadcast %335 : vector<1x256xi1> to vector<8x256xi1>
    %337 = vector.broadcast %cst_112 : f32 to vector<8x256xf32>
    %338 = arith.select %336, %333, %337 : vector<8x256xi1>, vector<8x256xf32>
    %c0_113 = arith.constant 0 : index
    %c15 = arith.constant 15 : index
    %339 = vector.load %arg7[%c0_113, %c15] : memref<8x25xf32, #tpu.memory_space<vmem>>, vector<8x1xf32>
    %340 = vector.broadcast %339 : vector<8x1xf32> to vector<8x256xf32>
    %341 = arith.mulf %338, %340 : vector<8x256xf32>
    %342 = arith.addf %332, %341 : vector<8x256xf32>
    %c241_i32_114 = arith.constant 241 : i32
    %343 = tpu.dynamic_rotate %187 by %c241_i32_114 dim 1 : vector<8x256xf32>, i32 -> vector<8x256xf32>
    %344 = arith.andi %37, %64 : vector<1x256xi1>
    %cst_115 = arith.constant 0.000000e+00 : f32
    %345 = vector.shape_cast %344 : vector<1x256xi1> to vector<1x256xi1>
    %346 = vector.broadcast %345 : vector<1x256xi1> to vector<8x256xi1>
    %347 = vector.broadcast %cst_115 : f32 to vector<8x256xf32>
    %348 = arith.select %346, %343, %347 : vector<8x256xi1>, vector<8x256xf32>
    %c0_116 = arith.constant 0 : index
    %c16 = arith.constant 16 : index
    %349 = vector.load %arg7[%c0_116, %c16] : memref<8x25xf32, #tpu.memory_space<vmem>>, vector<8x1xf32>
    %350 = vector.broadcast %349 : vector<8x1xf32> to vector<8x256xf32>
    %351 = arith.mulf %348, %350 : vector<8x256xf32>
    %352 = arith.addf %342, %351 : vector<8x256xf32>
    %c240_i32_117 = arith.constant 240 : i32
    %353 = tpu.dynamic_rotate %187 by %c240_i32_117 dim 1 : vector<8x256xf32>, i32 -> vector<8x256xf32>
    %354 = arith.andi %37, %73 : vector<1x256xi1>
    %cst_118 = arith.constant 0.000000e+00 : f32
    %355 = vector.shape_cast %354 : vector<1x256xi1> to vector<1x256xi1>
    %356 = vector.broadcast %355 : vector<1x256xi1> to vector<8x256xi1>
    %357 = vector.broadcast %cst_118 : f32 to vector<8x256xf32>
    %358 = arith.select %356, %353, %357 : vector<8x256xi1>, vector<8x256xf32>
    %c0_119 = arith.constant 0 : index
    %c17 = arith.constant 17 : index
    %359 = vector.load %arg7[%c0_119, %c17] : memref<8x25xf32, #tpu.memory_space<vmem>>, vector<8x1xf32>
    %360 = vector.broadcast %359 : vector<8x1xf32> to vector<8x256xf32>
    %361 = arith.mulf %358, %360 : vector<8x256xf32>
    %362 = arith.addf %352, %361 : vector<8x256xf32>
    %c239_i32_120 = arith.constant 239 : i32
    %363 = tpu.dynamic_rotate %187 by %c239_i32_120 dim 1 : vector<8x256xf32>, i32 -> vector<8x256xf32>
    %364 = arith.andi %37, %82 : vector<1x256xi1>
    %cst_121 = arith.constant 0.000000e+00 : f32
    %365 = vector.shape_cast %364 : vector<1x256xi1> to vector<1x256xi1>
    %366 = vector.broadcast %365 : vector<1x256xi1> to vector<8x256xi1>
    %367 = vector.broadcast %cst_121 : f32 to vector<8x256xf32>
    %368 = arith.select %366, %363, %367 : vector<8x256xi1>, vector<8x256xf32>
    %c0_122 = arith.constant 0 : index
    %c18 = arith.constant 18 : index
    %369 = vector.load %arg7[%c0_122, %c18] : memref<8x25xf32, #tpu.memory_space<vmem>>, vector<8x1xf32>
    %370 = vector.broadcast %369 : vector<8x1xf32> to vector<8x256xf32>
    %371 = arith.mulf %368, %370 : vector<8x256xf32>
    %372 = arith.addf %362, %371 : vector<8x256xf32>
    %c238_i32 = arith.constant 238 : i32
    %373 = tpu.dynamic_rotate %187 by %c238_i32 dim 1 : vector<8x256xf32>, i32 -> vector<8x256xf32>
    %374 = arith.andi %37, %91 : vector<1x256xi1>
    %cst_123 = arith.constant 0.000000e+00 : f32
    %375 = vector.shape_cast %374 : vector<1x256xi1> to vector<1x256xi1>
    %376 = vector.broadcast %375 : vector<1x256xi1> to vector<8x256xi1>
    %377 = vector.broadcast %cst_123 : f32 to vector<8x256xf32>
    %378 = arith.select %376, %373, %377 : vector<8x256xi1>, vector<8x256xf32>
    %c0_124 = arith.constant 0 : index
    %c19 = arith.constant 19 : index
    %379 = vector.load %arg7[%c0_124, %c19] : memref<8x25xf32, #tpu.memory_space<vmem>>, vector<8x1xf32>
    %380 = vector.broadcast %379 : vector<8x1xf32> to vector<8x256xf32>
    %381 = arith.mulf %378, %380 : vector<8x256xf32>
    %382 = arith.addf %372, %381 : vector<8x256xf32>
    %c226_i32 = arith.constant 226 : i32
    %383 = tpu.dynamic_rotate %187 by %c226_i32 dim 1 : vector<8x256xf32>, i32 -> vector<8x256xf32>
    %384 = arith.andi %46, %55 : vector<1x256xi1>
    %cst_125 = arith.constant 0.000000e+00 : f32
    %385 = vector.shape_cast %384 : vector<1x256xi1> to vector<1x256xi1>
    %386 = vector.broadcast %385 : vector<1x256xi1> to vector<8x256xi1>
    %387 = vector.broadcast %cst_125 : f32 to vector<8x256xf32>
    %388 = arith.select %386, %383, %387 : vector<8x256xi1>, vector<8x256xf32>
    %c0_126 = arith.constant 0 : index
    %c20 = arith.constant 20 : index
    %389 = vector.load %arg7[%c0_126, %c20] : memref<8x25xf32, #tpu.memory_space<vmem>>, vector<8x1xf32>
    %390 = vector.broadcast %389 : vector<8x1xf32> to vector<8x256xf32>
    %391 = arith.mulf %388, %390 : vector<8x256xf32>
    %392 = arith.addf %382, %391 : vector<8x256xf32>
    %c225_i32 = arith.constant 225 : i32
    %393 = tpu.dynamic_rotate %187 by %c225_i32 dim 1 : vector<8x256xf32>, i32 -> vector<8x256xf32>
    %394 = arith.andi %46, %64 : vector<1x256xi1>
    %cst_127 = arith.constant 0.000000e+00 : f32
    %395 = vector.shape_cast %394 : vector<1x256xi1> to vector<1x256xi1>
    %396 = vector.broadcast %395 : vector<1x256xi1> to vector<8x256xi1>
    %397 = vector.broadcast %cst_127 : f32 to vector<8x256xf32>
    %398 = arith.select %396, %393, %397 : vector<8x256xi1>, vector<8x256xf32>
    %c0_128 = arith.constant 0 : index
    %c21 = arith.constant 21 : index
    %399 = vector.load %arg7[%c0_128, %c21] : memref<8x25xf32, #tpu.memory_space<vmem>>, vector<8x1xf32>
    %400 = vector.broadcast %399 : vector<8x1xf32> to vector<8x256xf32>
    %401 = arith.mulf %398, %400 : vector<8x256xf32>
    %402 = arith.addf %392, %401 : vector<8x256xf32>
    %c224_i32 = arith.constant 224 : i32
    %403 = tpu.dynamic_rotate %187 by %c224_i32 dim 1 : vector<8x256xf32>, i32 -> vector<8x256xf32>
    %404 = arith.andi %46, %73 : vector<1x256xi1>
    %cst_129 = arith.constant 0.000000e+00 : f32
    %405 = vector.shape_cast %404 : vector<1x256xi1> to vector<1x256xi1>
    %406 = vector.broadcast %405 : vector<1x256xi1> to vector<8x256xi1>
    %407 = vector.broadcast %cst_129 : f32 to vector<8x256xf32>
    %408 = arith.select %406, %403, %407 : vector<8x256xi1>, vector<8x256xf32>
    %c0_130 = arith.constant 0 : index
    %c22 = arith.constant 22 : index
    %409 = vector.load %arg7[%c0_130, %c22] : memref<8x25xf32, #tpu.memory_space<vmem>>, vector<8x1xf32>
    %410 = vector.broadcast %409 : vector<8x1xf32> to vector<8x256xf32>
    %411 = arith.mulf %408, %410 : vector<8x256xf32>
    %412 = arith.addf %402, %411 : vector<8x256xf32>
    %c223_i32 = arith.constant 223 : i32
    %413 = tpu.dynamic_rotate %187 by %c223_i32 dim 1 : vector<8x256xf32>, i32 -> vector<8x256xf32>
    %414 = arith.andi %46, %82 : vector<1x256xi1>
    %cst_131 = arith.constant 0.000000e+00 : f32
    %415 = vector.shape_cast %414 : vector<1x256xi1> to vector<1x256xi1>
    %416 = vector.broadcast %415 : vector<1x256xi1> to vector<8x256xi1>
    %417 = vector.broadcast %cst_131 : f32 to vector<8x256xf32>
    %418 = arith.select %416, %413, %417 : vector<8x256xi1>, vector<8x256xf32>
    %c0_132 = arith.constant 0 : index
    %c23 = arith.constant 23 : index
    %419 = vector.load %arg7[%c0_132, %c23] : memref<8x25xf32, #tpu.memory_space<vmem>>, vector<8x1xf32>
    %420 = vector.broadcast %419 : vector<8x1xf32> to vector<8x256xf32>
    %421 = arith.mulf %418, %420 : vector<8x256xf32>
    %422 = arith.addf %412, %421 : vector<8x256xf32>
    %c222_i32 = arith.constant 222 : i32
    %423 = tpu.dynamic_rotate %187 by %c222_i32 dim 1 : vector<8x256xf32>, i32 -> vector<8x256xf32>
    %424 = arith.andi %46, %91 : vector<1x256xi1>
    %cst_133 = arith.constant 0.000000e+00 : f32
    %425 = vector.shape_cast %424 : vector<1x256xi1> to vector<1x256xi1>
    %426 = vector.broadcast %425 : vector<1x256xi1> to vector<8x256xi1>
    %427 = vector.broadcast %cst_133 : f32 to vector<8x256xf32>
    %428 = arith.select %426, %423, %427 : vector<8x256xi1>, vector<8x256xf32>
    %c0_134 = arith.constant 0 : index
    %c24 = arith.constant 24 : index
    %429 = vector.load %arg7[%c0_134, %c24] : memref<8x25xf32, #tpu.memory_space<vmem>>, vector<8x1xf32>
    %430 = vector.broadcast %429 : vector<8x1xf32> to vector<8x256xf32>
    %431 = arith.mulf %428, %430 : vector<8x256xf32>
    %432 = arith.addf %422, %431 : vector<8x256xf32>
    %c0_135 = arith.constant 0 : index
    %c0_136 = arith.constant 0 : index
    %433 = vector.load %arg8[%c0_135, %c0_136] : memref<8x8xf32, #tpu.memory_space<vmem>>, vector<8x8xf32>
    %cst_137 = arith.constant dense<0.000000e+00> : vector<8x256xf32>
    %434 = tpu.matmul %433, %432, %cst_137 {dimension_numbers = #tpu.dot_dimension_numbers<[1], [0], [0], [1], [0, 0, 1, 1], [], []>} : vector<8x8xf32>, vector<8x256xf32>, vector<8x256xf32> -> vector<8x256xf32>
    %435 = arith.addf %182, %434 : vector<8x256xf32>
    %c0_138 = arith.constant 0 : index
    %c0_139 = arith.constant 0 : index
    %436 = vector.load %arg9[%c0_138, %c0_139] : memref<8x1xf32, #tpu.memory_space<vmem>>, vector<8x1xf32>
    %437 = vector.broadcast %436 : vector<8x1xf32> to vector<8x256xf32>
    %438 = arith.addf %435, %437 : vector<8x256xf32>
    %c0_140 = arith.constant 0 : index
    %c0_141 = arith.constant 0 : index
    %439 = vector.load %arg10[%c0_140, %c0_141] : memref<32x8xf32, #tpu.memory_space<vmem>>, vector<32x8xf32>
    %cst_142 = arith.constant dense<0.000000e+00> : vector<32x256xf32>
    %440 = tpu.matmul %439, %438, %cst_142 {dimension_numbers = #tpu.dot_dimension_numbers<[1], [0], [0], [1], [0, 0, 1, 1], [], []>} : vector<32x8xf32>, vector<8x256xf32>, vector<32x256xf32> -> vector<32x256xf32>
    %c0_143 = arith.constant 0 : index
    %c0_144 = arith.constant 0 : index
    %441 = vector.load %arg11[%c0_143, %c0_144] : memref<32x1xf32, #tpu.memory_space<vmem>>, vector<32x1xf32>
    %442 = vector.broadcast %441 : vector<32x1xf32> to vector<32x256xf32>
    %443 = arith.addf %440, %442 : vector<32x256xf32>
    %cst_145 = arith.constant 5.000000e-01 : f32
    %444 = vector.broadcast %cst_145 : f32 to vector<32x256xf32>
    %445 = arith.mulf %444, %443 : vector<32x256xf32>
    %cst_146 = arith.constant 0.707106769 : f32
    %446 = vector.broadcast %cst_146 : f32 to vector<32x256xf32>
    %447 = arith.mulf %443, %446 : vector<32x256xf32>
    %448 = math.absf %447 : vector<32x256xf32>
    %cst_147 = arith.constant 0.327591091 : f32
    %449 = vector.broadcast %cst_147 : f32 to vector<32x256xf32>
    %450 = arith.mulf %449, %448 : vector<32x256xf32>
    %cst_148 = arith.constant 1.000000e+00 : f32
    %451 = vector.broadcast %cst_148 : f32 to vector<32x256xf32>
    %452 = arith.addf %451, %450 : vector<32x256xf32>
    %453 = tpu.reciprocal %452 {approx = true} : vector<32x256xf32> -> vector<32x256xf32>
    %cst_149 = arith.constant 1.06140542 : f32
    %454 = vector.broadcast %cst_149 : f32 to vector<32x256xf32>
    %455 = arith.mulf %454, %453 : vector<32x256xf32>
    %cst_150 = arith.constant -1.45315206 : f32
    %456 = vector.broadcast %cst_150 : f32 to vector<32x256xf32>
    %457 = arith.addf %455, %456 : vector<32x256xf32>
    %458 = arith.mulf %457, %453 : vector<32x256xf32>
    %cst_151 = arith.constant 1.42141378 : f32
    %459 = vector.broadcast %cst_151 : f32 to vector<32x256xf32>
    %460 = arith.addf %458, %459 : vector<32x256xf32>
    %461 = arith.mulf %460, %453 : vector<32x256xf32>
    %cst_152 = arith.constant -0.284496725 : f32
    %462 = vector.broadcast %cst_152 : f32 to vector<32x256xf32>
    %463 = arith.addf %461, %462 : vector<32x256xf32>
    %464 = arith.mulf %463, %453 : vector<32x256xf32>
    %cst_153 = arith.constant 0.254829586 : f32
    %465 = vector.broadcast %cst_153 : f32 to vector<32x256xf32>
    %466 = arith.addf %464, %465 : vector<32x256xf32>
    %467 = arith.mulf %466, %453 : vector<32x256xf32>
    %cst_154 = arith.constant 0.000000e+00 : f32
    %468 = vector.broadcast %cst_154 : f32 to vector<32x256xf32>
    %469 = arith.subf %468, %448 : vector<32x256xf32>
    %470 = arith.mulf %469, %448 : vector<32x256xf32>
    %471 = math.exp %470 : vector<32x256xf32>
    %472 = arith.mulf %467, %471 : vector<32x256xf32>
    %cst_155 = arith.constant 1.000000e+00 : f32
    %473 = vector.broadcast %cst_155 : f32 to vector<32x256xf32>
    %474 = arith.subf %473, %472 : vector<32x256xf32>
    %cst_156 = arith.constant 0.000000e+00 : f32
    %475 = vector.broadcast %cst_156 : f32 to vector<32x256xf32>
    %476 = arith.cmpf oge, %447, %475 : vector<32x256xf32>
    %cst_157 = arith.constant 0.000000e+00 : f32
    %477 = vector.broadcast %cst_157 : f32 to vector<32x256xf32>
    %478 = arith.subf %477, %474 : vector<32x256xf32>
    %479 = arith.select %476, %474, %478 : vector<32x256xi1>, vector<32x256xf32>
    %cst_158 = arith.constant 1.000000e+00 : f32
    %480 = vector.broadcast %cst_158 : f32 to vector<32x256xf32>
    %481 = arith.addf %480, %479 : vector<32x256xf32>
    %482 = arith.mulf %445, %481 : vector<32x256xf32>
    %c0_159 = arith.constant 0 : index
    %c0_160 = arith.constant 0 : index
    %483 = vector.load %arg12[%c0_159, %c0_160] : memref<8x32xf32, #tpu.memory_space<vmem>>, vector<8x32xf32>
    %cst_161 = arith.constant dense<0.000000e+00> : vector<8x256xf32>
    %484 = tpu.matmul %483, %482, %cst_161 {dimension_numbers = #tpu.dot_dimension_numbers<[1], [0], [0], [1], [0, 0, 1, 1], [], []>} : vector<8x32xf32>, vector<32x256xf32>, vector<8x256xf32> -> vector<8x256xf32>
    %485 = arith.addf %438, %484 : vector<8x256xf32>
    %c0_162 = arith.constant 0 : index
    %c0_163 = arith.constant 0 : index
    %486 = vector.load %arg13[%c0_162, %c0_163] : memref<8x1xf32, #tpu.memory_space<vmem>>, vector<8x1xf32>
    %487 = vector.broadcast %486 : vector<8x1xf32> to vector<8x256xf32>
    %488 = arith.addf %485, %487 : vector<8x256xf32>
    %c0_164 = arith.constant 0 : index
    %c0_165 = arith.constant 0 : index
    %c0_166 = arith.constant 0 : index
    %489 = vector.load %arg14[%c0_164, %c0_165, %c0_166] : memref<1x8x256xf32, #tpu.memory_space<vmem>>, vector<1x8x256xf32>
    %490 = vector.shape_cast %489 : vector<1x8x256xf32> to vector<8x256xf32>
    %491 = vector.shape_cast %488 : vector<8x256xf32> to vector<1x8x256xf32>
    tpu.vector_store %arg14[%c0_164, %c0_165, %c0_166], %491 {strides = array<i32>} : memref<1x8x256xf32, #tpu.memory_space<vmem>>, vector<1x8x256xf32>,
    return
  }
  func.func @transform_0(%arg0: i32) -> (i32, i32, i32) {
    %c0_i32 = arith.constant 0 : i32
    %c0_i32_0 = arith.constant 0 : i32
    %c0_i32_1 = arith.constant 0 : i32
    return %arg0, %c0_i32, %c0_i32_0 : i32, i32, i32
  }
  func.func @transform_1(%arg0: i32) -> (i32, i32) {
    %c0_i32 = arith.constant 0 : i32
    %c0_i32_0 = arith.constant 0 : i32
    %c0_i32_1 = arith.constant 0 : i32
    return %c0_i32, %c0_i32_0 : i32, i32
  }
  func.func @transform_2(%arg0: i32) -> (i32, i32) {
    %c0_i32 = arith.constant 0 : i32
    %c0_i32_0 = arith.constant 0 : i32
    %c0_i32_1 = arith.constant 0 : i32
    return %c0_i32, %c0_i32_0 : i32, i32
  }
  func.func @transform_3(%arg0: i32) -> (i32, i32) {
    %c0_i32 = arith.constant 0 : i32
    %c0_i32_0 = arith.constant 0 : i32
    %c0_i32_1 = arith.constant 0 : i32
    return %c0_i32, %c0_i32_0 : i32, i32
  }
  func.func @transform_4(%arg0: i32) -> (i32, i32) {
    %c0_i32 = arith.constant 0 : i32
    %c0_i32_0 = arith.constant 0 : i32
    %c0_i32_1 = arith.constant 0 : i32
    return %c0_i32, %c0_i32_0 : i32, i32
  }
  func.func @transform_5(%arg0: i32) -> (i32, i32) {
    %c0_i32 = arith.constant 0 : i32
    %c0_i32_0 = arith.constant 0 : i32
    %c0_i32_1 = arith.constant 0 : i32
    return %c0_i32, %c0_i32_0 : i32, i32
  }
  func.func @transform_6(%arg0: i32) -> (i32, i32) {
    %c0_i32 = arith.constant 0 : i32
    %c0_i32_0 = arith.constant 0 : i32
    %c0_i32_1 = arith.constant 0 : i32
    return %c0_i32, %c0_i32_0 : i32, i32
  }
  func.func @transform_7(%arg0: i32) -> (i32, i32) {
    %c0_i32 = arith.constant 0 : i32
    %c0_i32_0 = arith.constant 0 : i32
    %c0_i32_1 = arith.constant 0 : i32
    return %c0_i32, %c0_i32_0 : i32, i32
  }
  func.func @transform_8(%arg0: i32) -> (i32, i32) {
    %c0_i32 = arith.constant 0 : i32
    %c0_i32_0 = arith.constant 0 : i32
    %c0_i32_1 = arith.constant 0 : i32
    return %c0_i32, %c0_i32_0 : i32, i32
  }
  func.func @transform_9(%arg0: i32) -> (i32, i32) {
    %c0_i32 = arith.constant 0 : i32
    %c0_i32_0 = arith.constant 0 : i32
    %c0_i32_1 = arith.constant 0 : i32
    return %c0_i32, %c0_i32_0 : i32, i32
  }
  func.func @transform_10(%arg0: i32) -> (i32, i32) {
    %c0_i32 = arith.constant 0 : i32
    %c0_i32_0 = arith.constant 0 : i32
    %c0_i32_1 = arith.constant 0 : i32
    return %c0_i32, %c0_i32_0 : i32, i32
  }
  func.func @transform_11(%arg0: i32) -> (i32, i32) {
    %c0_i32 = arith.constant 0 : i32
    %c0_i32_0 = arith.constant 0 : i32
    %c0_i32_1 = arith.constant 0 : i32
    return %c0_i32, %c0_i32_0 : i32, i32
  }
  func.func @transform_12(%arg0: i32) -> (i32, i32) {
    %c0_i32 = arith.constant 0 : i32
    %c0_i32_0 = arith.constant 0 : i32
    %c0_i32_1 = arith.constant 0 : i32
    return %c0_i32, %c0_i32_0 : i32, i32
  }
  func.func @transform_13(%arg0: i32) -> (i32, i32, i32) {
    %c0_i32 = arith.constant 0 : i32
    %c0_i32_0 = arith.constant 0 : i32
    %c0_i32_1 = arith.constant 0 : i32
    return %arg0, %c0_i32, %c0_i32_0 : i32, i32, i32
  }
}

</mosaic_0001>

<bundles_post_ra>
// kernel: cblock_ln_forward.1
= control target key start
LH: loop header
LB: loop body
LE: loop exit
PB: predicated region body
PF: predicated region fallthrough
CT: control target
= control target key end

     0   :  { %s2264_s25 = smov 0   ;;  %s3556_s0 = inlined_call_operand.vmem [shape: f32[2,8,256], index: 0, kind: input, shape index: {}]   ;;  %s3557_s1 = inlined_call_operand.vmem [shape: s32[2,256], index: 1, kind: input, shape index: {}]   ;;  %s3558_s2 = inlined_call_operand.vmem [shape: f32[8,9], index: 2, kind: input, shape index: {}]   ;;  %s3559_s3 = inlined_call_operand.vmem [shape: f32[8,1], index: 3, kind: input, shape index: {}]   ;;  %s3560_s4 = inlined_call_operand.vmem [shape: f32[8,8], index: 4, kind: input, shape index: {}]   ;;  %s3561_s5 = inlined_call_operand.vmem [shape: f32[8,1], index: 5, kind: input, shape index: {}]   ;;  %s3562_s6 = inlined_call_operand.vmem [shape: f32[8,25], index: 6, kind: input, shape index: {}]   ;;  %s3563_s7 = inlined_call_operand.vmem [shape: f32[8,8], index: 7, kind: input, shape index: {}]   ;;  %s3564_s8 = inlined_call_operand.vmem [shape: f32[8,1], index: 8, kind: input, shape index: {}]   ;;  %s3565_s9 = inlined_call_operand.vmem [shape: f32[32,8], index: 9, kind: input, shape index: {}]   ;;  %s3566_s10 = inlined_call_operand.vmem [shape: f32[32,1], index: 10, kind: input, shape index: {}]   ;;  %s3567_s11 = inlined_call_operand.vmem [shape: f32[8,32], index: 11, kind: input, shape index: {}]   ;;  %s3568_s12 = inlined_call_operand.vmem [shape: f32[8,1], index: 12, kind: input, shape index: {}]   ;;  %s3569_s13 = inlined_call_operand.vmem [shape: f32[2,8,256], index: 13, kind: output, shape index: {}]  }
   0x1 LB: > { %s1987_s26 = sadd.s32 4294967295, %s2142_s25   ;;  %p1991_p0 = scmp.ge.s32.totalorder %s2142_s25, 1  ;;  %s2142_s25 = sphi %s2264_s25, %s23_s25  }
   0x2   : > { %p387_p1 = scmp.lt.s32.totalorder %s2142_s25, 3 }
   0x4   : > { %p388_p2 = pnand %p1991_p0, %p387_p1 }
   0x6   : > { %391 = sbr.rel (%p388_p2) target bundleno = 1357 (0x54d), region = 72 }
   0xb   : > { %v507_v0 = vld [vmem:[%s3558_s2] sm:$0xff]  ;;  %p431_p3 = scmp.lt.s32.totalorder %s1987_s26, 1  ;;  %v2144_v1 = vmov 2   ;;  %v3596_v2 = vmov 0   ;;  %v2146_v4 = vmov 1   ;;  %v2147_v5 = vmov 6  }
   0xc   : > { %2068 = vset.pattern.permute.xlu1 %v2144_v1  ;;  %2066 = vset.pattern.permute.xlu0 %v3596_v2  ;;  %s2148_s16 = smov 17   ;;  %s2149_s17 = smov 16   ;;  %v2150_v7 = vmov 3   ;;  %v2152_v8 = vmov 4   ;;  %v2153_v9 = vmov 5   ;;  %v2156_v10 = vmov 8  }
   0xd   : > { %568 = vperm.xlu1 %2068, %v507_v0   ;;  %510 = vperm.xlu0 %2066, %v507_v0   ;;  %s3838_s26 = smov (!%p431_p3, %s1987_s26), 1  ;;  %s2151_s18 = smov 15   ;;  %v2158_v11 = vmov 7   ;;  %v730_v12 = vld [vmem:[%s3559_s3] sm:$0xff]  ;;  %v3592_v13 = vmov 0.0   ;;  %v2162_v16 = vmov 14   ;;  %v488_v41 = vlaneseq }
   0xe   : > { %s3582_s29 = sshll.u32 %s3838_s26, 4  ;;  %s2154_s19 = smov 1   ;;  %813 = vmatprep.mubr.f32.mxu1 %v3592_v13  ;;  %1611 = vmatprep.mubr.f32.mxu0 %v3592_v13  ;;  %v2332_v14 = vld [vmem:[%s3562_s6] sm:$0xff]  ;;  %v2163_v17 = vmov 15   ;;  %v2164_v18 = vmov 9   ;;  %v2165_v19 = vmov 10  }
   0xf   : > { %s435_s15 = scalar_lea.vmem %s3556_s0, %s3582_s29  ;;  %s2155_s20 = smov 127   ;;  %v739_v15 = vld [vmem:[%s3561_s5] sm:$0xff]  ;;  %v2166_v20 = vmov 11   ;;  %v2167_v21 = vmov 12   ;;  %v2168_v22 = vmov 13   ;;  %v2169_v23 = vmov 16  }
  0x10   : > { %v2285_v3 = vld [vmem:[%s435_s15] sm:$0xff]  ;;  %v2290_v6 = vld [vmem:[%s435_s15 + $0x8] sm:$0xff]  ;;  %s2157_s21 = smov 113   ;;  %s2159_s22 = smov 111   ;;  %v2170_v25 = vmov 17   ;;  %v2171_v30 = vmov 18  }
  0x11   : > { %2067 = vset.pattern.permute.xlu0 %v2146_v4  ;;  %2072 = vset.pattern.permute.xlu1 %v2147_v5  ;;  %s2160_s27 = smov 112   ;;  %v2365_v27 = vld [vmem:[%s3557_s1] ss:$2 sm:$0x3]  ;;  %v2172_v35 = vmov 19   ;;  %v3624_v38 = vmov 0 }
  0x12   : > { %484 = vrot.lane.b32.xlu1 %v2285_v3, %s2148_s16  ;;  %539 = vperm.xlu0 %2067, %v507_v0   ;;  %v2372_v29 = vld [vmem:[%s3557_s1 + $0x1] ss:$2 sm:$0x3]  ;;  %v448_v32 = vadd.s32 4294967295, %v2365_v27  ;;  %v3626_v40 = vmov 0  ;;  %vm452_vm11 = vcmp.ge.s32.totalorder %v2365_v27, 0 }
  0x13   : > { %v467_v33 = vadd.s32 4294967295, %v2372_v29  ;;  %v474_v37 = vadd.s32 1, %v2372_v29  ;;  %vm471_vm6 = vcmp.ge.s32.totalorder %v2372_v29, 0  ;;  %vm472_vm7 = vcmp.lt.s32.totalorder %v2372_v29, 16  ;;  %s2174_s23 = smov 32   ;;  %s2175_s24 = smov 34  }
  0x14   : > { %vm449_vm0 = vcmp.ge.s32.totalorder %v448_v32, 0  ;;  %vm450_vm1 = vcmp.lt.s32.totalorder %v448_v32, 16  ;;  %vm453_vm12 = vcmp.lt.s32.totalorder %v2365_v27, 16  ;;  %v496_v44 = vshrl.u32 %v488_v41, 7  ;;  %vm2403_vm13 = vmand %vm471_vm6, %vm472_vm7  ;;  %s3583_s28 = smov 126   ;;  %s2177_s30 = smov 33  }
  0x15   : > { %vm468_vm2 = vcmp.ge.s32.totalorder %v467_v33, 0  ;;  %vm469_vm3 = vcmp.lt.s32.totalorder %v467_v33, 16  ;;  %vm2385_vm4 = vmand %vm449_vm0, %vm450_vm1  ;;  %vm475_vm8 = vcmp.ge.s32.totalorder %v474_v37, 0  ;;  %vm476_vm9 = vcmp.lt.s32.totalorder %v474_v37, 16  ;;  %s2178_s14 = smov 31   ;;  %s2179_s15 = smov 30  }
  0x16   : > { %486 = vrot.lane.b32.xlu1 %v2290_v6, %s2148_s16  ;;  %517 = vrot.lane.b32.xlu0 %v2285_v3, %s2149_s17  ;;  %v3625_v38 = vsel %vm2385_vm4, 4294967295, %v3624_v38  ;;  %vm2391_vm5 = vmand %vm468_vm2, %vm469_vm3  ;;  %v3629_v45 = vmov 0  ;;  %v3632_v46 = vmov 0  ;;  %v3635_v48 = vmov 0  ;;  %s2180_s29 = smov 18  }
  0x17   : > { %2069 = vset.pattern.permute.xlu0 %v2150_v7  ;;  %v3627_v40 = vsel %vm2391_vm5, 4294967295, %v3626_v40  ;;  %vm493_vm10 = vmand %vm2385_vm4, %vm2391_vm5  ;;  %v3630_v45 = vsel %vm2403_vm13, 4294967295, %v3629_v45  ;;  %v455_v49 = vadd.s32 1, %v2365_v27  ;;  %v2422_v51 = vsub.s32 0, %v496_v44 }
  0x18   : > { %3628 = vst [vmem:[#allocation2_spill] sm:$0xff] %v3627_v40  ;;  %3631 = vst [vmem:[#allocation3_spill] sm:$0xff] %v3630_v45  ;;  %v2424_v52 = vsub.s32 1, %v496_v44  ;;  %v494_v53 = vsel %vm493_vm10, 1, %v3596_v2  ;;  %v2442_v57 = vand.u32 127, %v488_v41  ;;  %v3657_v37 = vmov 0 }
  0x19   : > { %vm2407_vm14 = vmand %vm475_vm8, %vm476_vm9  ;;  %vm456_vm3 = vcmp.ge.s32.totalorder %v455_v49, 0  ;;  %vm457_vm6 = vcmp.lt.s32.totalorder %v455_v49, 16  ;;  %v498_v58 = vrot.slane %v494_v53, %v2422_v51 }
  0x1a   : > { %519 = vrot.lane.b32.xlu1 %v2290_v6, %s2149_s17  ;;  %597 = vperm.xlu0 %2069, %v507_v0   ;;  %v3633_v46 = vsel %vm2407_vm14, 4294967295, %v3632_v46  ;;  %vm2413_vm15 = vmand %vm452_vm11, %vm453_vm12  ;;  %v502_v59 = vrot.slane %v494_v53, %v2424_v52  ;;  %vm3572_vm8 = vcmp.lt.s32.totalorder %v2442_v57, 16 }
  0x1b   : > { %3634 = vst [vmem:[#allocation4_spill] sm:$0xff] %v3633_v46  ;;  %v3636_v48 = vsel %vm2413_vm15, 4294967295, %v3635_v48  ;;  %vm524_vm0 = vmand %vm2385_vm4, %vm2403_vm13  ;;  %vm2464_vm11 = vcmp.eq.s32.totalorder %v498_v58, 1 }
  0x1c   : > { %vm553_vm1 = vmand %vm2385_vm4, %vm2407_vm14  ;;  %v525_v54 = vsel %vm524_vm0, 1, %v3596_v2  ;;  %vm2468_vm12 = vcmp.eq.s32.totalorder %v502_v59, 1  ;;  %vm3655_vm4 = vcmp.lt.s32.totalorder %v2442_v57, 15 }
  0x1d   : > { %vm582_vm2 = vmand %vm2413_vm15, %vm2391_vm5  ;;  %v554_v55 = vsel %vm553_vm1, 1, %v3596_v2  ;;  %v529_v62 = vrot.slane %v525_v54, %v2422_v51  ;;  %v533_v63 = vrot.slane %v525_v54, %v2424_v52 }
  0x1e   : > { %546 = vrot.lane.b32.xlu1 %v2285_v3, %s2151_s18  ;;  %2070 = vset.pattern.permute.xlu0 %v2152_v8  ;;  %v583_v61 = vsel %vm582_vm2, 1, %v3596_v2  ;;  %vm2451_vm7 = vmand %vm456_vm3, %vm457_vm6 }
  0x1f   : > { %605 = vperm.xlu0 %2070, %v507_v0   ;;  %vm619_vm9 = vmand %vm2413_vm15, %vm2407_vm14  ;;  %vm2478_vm1 = vcmp.eq.s32.totalorder %v529_v62, 1  ;;  %vm2482_vm2 = vcmp.eq.s32.totalorder %v533_v63, 1 }
  0x20   : > { %vm648_vm0 = vmand %vm2451_vm7, %vm2391_vm5 }
  0x21   : > { %vm3656_vm3 = vmmov %vm3655_vm4 }
  0x22   : > { %548 = vrot.lane.b32.xlu1 %v2290_v6, %s2151_s18 }
  0x23   : > { %2071 = vset.pattern.permute.xlu0 %v2153_v9 }
  0x24   : > { %634 = vperm.xlu0 %2071, %v507_v0  }
  0x26   : > { %575 = vrot.lane.b32.xlu1 %v2285_v3, %s2154_s19 }
  0x28   : > { %614 = vrot.lane.b32.xlu0 %v2290_v6, %s2155_s20 }
  0x29   : > { %2074 = vset.pattern.permute.xlu0 %v2156_v10 }
  0x2a   : > { %577 = vrot.lane.b32.xlu1 %v2290_v6, %s2154_s19 }
  0x2c   : > { %641 = vrot.lane.b32.xlu0 %v2285_v3, %s2157_s21 }
  0x2e   : > { %663 = vperm.xlu1 %2072, %v507_v0  }
  0x30   : > { %721 = vperm.xlu0 %2074, %v507_v0  }
  0x32   : > { %612 = vrot.lane.b32.xlu1 %v2285_v3, %s2155_s20 }
  0x33   : > { %2073 = vset.pattern.permute.xlu1 %v2158_v11 }
  0x34   : > { %699 = vrot.lane.b32.xlu0 %v2285_v3, %s2159_s22 }
  0x35   : > { %2075 = vset.pattern.permute.xlu0 %v3596_v2 }
  0x36   : > { %692 = vperm.xlu1 %2073, %v507_v0   ;;  %v3637_v0 = vmov 0 }
  0x37   : > { %v3638_v0 = vsel %vm2451_vm7, 4294967295, %v3637_v0 }
  0x38   : > { %733 = vperm.xlu0 %2075, %v730_v12   ;;  %v591_v12 = vrot.slane %v583_v61, %v2424_v52 }
  0x3a   : > { %643 = vrot.lane.b32.xlu1 %v2290_v6, %s2157_s21 }
  0x3b   : > { %2076 = vset.pattern.permute.xlu1 %v3596_v2 }
  0x3c   : > { %2077 = vset.pattern.permute.xlu0 %v2146_v4  ;;  %v562_v4 = vrot.slane %v554_v55, %v2424_v52 }
  0x3d   : > { %873 = vperm.xlu0 %2077, %v2332_v14  }
  0x3e   : > { %670 = vrot.lane.b32.xlu1 %v2285_v3, %s2160_s27  ;;  %vm2501_vm10 = vcmp.eq.s32.totalorder %v562_v4, 1 }
  0x41   : > { %2080 = vset.pattern.permute.xlu0 %v2152_v8 }
  0x42   : > { %672 = vrot.lane.b32.xlu1 %v2290_v6, %s2160_s27  ;;  %960 = vperm.xlu0 %2080, %v2332_v14  }
  0x46   : > { %701 = vrot.lane.b32.xlu1 %v2290_v6, %s2159_s22  ;;  %2081 = vset.pattern.permute.xlu0 %v2153_v9 }
  0x47   : > { %989 = vperm.xlu0 %2081, %v2332_v14  }
  0x4a   : > { %742 = vperm.xlu1 %2076, %v739_v15  }
  0x4b   : > { %2082 = vset.pattern.permute.xlu0 %v2147_v5  ;;  %v587_v5 = vrot.slane %v583_v61, %v2422_v51 }
  0x4c   : > { %1005 = vperm.xlu0 %2082, %v2332_v14  }
  0x4d   : > { %vm2506_vm15 = vcmp.eq.s32.totalorder %v587_v5, 1  ;;  %v3661_v5 = vmov 0 }
  0x4e   : > { %844 = vperm.xlu1 %2076, %v2332_v14  }
  0x50   : > { %2083 = vset.pattern.permute.xlu0 %v2158_v11 }
  0x51   : > { %1021 = vperm.xlu0 %2083, %v2332_v14  }
  0x52   : > { %2078 = vset.pattern.permute.xlu1 %v2144_v1  ;;  %v558_v1 = vrot.slane %v554_v55, %v2422_v51 }
  0x53   : > { %902 = vperm.xlu1 %2078, %v2332_v14  }
  0x54   : > { %vm2494_vm6 = vcmp.eq.s32.totalorder %v558_v1, 1 }
  0x55   : > { %2084 = vset.pattern.permute.xlu0 %v2156_v10 }
  0x56   : > { %1037 = vperm.xlu0 %2084, %v2332_v14  }
  0x57   : > { %2079 = vset.pattern.permute.xlu1 %v2150_v7 }
  0x58   : > { %931 = vperm.xlu1 %2079, %v2332_v14  }
  0x5a   : > { %2085 = vset.pattern.permute.xlu0 %v2164_v18 }
  0x5b   : > { %1066 = vperm.xlu0 %2085, %v2332_v14  }
  0x5c   : > { %2090 = vset.pattern.permute.xlu1 %v2162_v16 }
  0x5d   : > { %1164 = vperm.xlu1 %2090, %v2332_v14  }
  0x5f   : > { %2086 = vset.pattern.permute.xlu0 %v2165_v19  ;;  %v620_v19 = vsel %vm619_vm9, 1, %v3596_v2 }
  0x60   : > { %1095 = vperm.xlu0 %2086, %v2332_v14  }
  0x61   : > { %2091 = vset.pattern.permute.xlu1 %v2163_v17  ;;  %v3647_v17 = vmov 0 }
  0x62   : > { %1193 = vperm.xlu1 %2091, %v2332_v14   ;;  %v3648_v17 = vsel %vm2494_vm6, 4294967295, %v3647_v17 }
  0x64   : > { %2087 = vset.pattern.permute.xlu0 %v2166_v20  ;;  %v3649_v20 = vmov 0 }
  0x65   : > { %1111 = vperm.xlu0 %2087, %v2332_v14   ;;  %v3650_v20 = vsel %vm2501_vm10, 4294967295, %v3649_v20 }
  0x66   : > { %2102 = vset.pattern.permute.xlu1 %v3596_v2 }
  0x69   : > { %2088 = vset.pattern.permute.xlu0 %v2167_v21  ;;  %v3651_v21 = vmov 0 }
  0x6a   : > { %1119 = vperm.xlu0 %2088, %v2332_v14   ;;  %v3652_v21 = vsel %vm2506_vm15, 4294967295, %v3651_v21 }
  0x6e   : > { %2089 = vset.pattern.permute.xlu0 %v2168_v22  ;;  %v649_v22 = vsel %vm648_vm0, 1, %v3596_v2  ;;  %vm3659_vm0 = vcmp.lt.s32.totalorder %v2442_v57, 1 }
  0x6f   : > { %1135 = vperm.xlu0 %2089, %v2332_v14   ;;  %v657_v61 = vrot.slane %v649_v22, %v2424_v52 }
  0x73   : > { %2092 = vset.pattern.permute.xlu0 %v2169_v23 }
  0x74   : > { %1209 = vperm.xlu0 %2092, %v2332_v14  }
  0x78   : > { %2093 = vset.pattern.permute.xlu0 %v2170_v25 }
  0x79   : > { %1225 = vperm.xlu0 %2093, %v2332_v14  }
  0x7d   : > { %2094 = vset.pattern.permute.xlu0 %v2171_v30 }
  0x7e   : > { %1241 = vperm.xlu0 %2094, %v2332_v14  }
  0x82   : > { %2095 = vset.pattern.permute.xlu0 %v2172_v35 }
  0x83   : > { %1270 = vperm.xlu0 %2095, %v2332_v14  }
  0x88   : > { %v2357_v24 = vpop.permute.xlu1 %568  ;;  %v2367_v28 = vpop.permute.xlu0 %510 }
  0x8c   : > { %v2360_v26 = vpop.permute.xlu1 %484 }
  0x8d   : > { %v2381_v36 = vpop.permute.xlu0 %539 }
  0x90   : > { %v2374_v31 = vpop.permute.xlu1 %486 }
  0x91   : > { %v518_v42 = vpop.permute.xlu0 %517 }
  0x94   : > { %v2379_v34 = vpop.permute.xlu1 %519 }
  0x95   : > { %v2411_v47 = vpop.permute.xlu0 %597  ;;  %v522_v15 = vsel %vm3572_vm8, %v518_v42, %v2379_v34  ;;  %v523_v16 = vsel %vm3572_vm8, %v2379_v34, %v518_v42  ;;  %vm3653_vm8 = vcmp.lt.s32.totalorder %v2442_v57, 17  ;;  %v653_v42 = vrot.slane %v649_v22, %v2422_v51 }
  0x96   : > { %v491_v23 = vsel %vm3653_vm8, %v2360_v26, %v2374_v31  ;;  %vm3654_vm9 = vmmov %vm3653_vm8  ;;  %v536_v34 = vsel %vm2478_vm1, %v523_v16, 0.0  ;;  %v537_v35 = vsel %vm2482_vm2, %v522_v15, 0.0  ;;  %vm2529_vm8 = vcmp.eq.s32.totalorder %v591_v12, 1 }
  0x97   : > { %v492_v25 = vsel %vm3654_vm9, %v2374_v31, %v2360_v26  ;;  %v3658_v37 = vsel %vm2529_vm8, 4294967295, %v3657_v37  ;;  %v624_v26 = vrot.slane %v620_v19, %v2422_v51  ;;  %v506_v44 = vsel %vm2468_vm12, %v491_v23, 0.0 }
  0x98   : > { %v2389_v39 = vpop.permute.xlu1 %546  ;;  %v542_v53 = vmul.f32 %v2381_v36, %v536_v34  ;;  %v543_v54 = vmul.f32 %v2381_v36, %v537_v35  ;;  %v514_v1 = vmul.f32 %v2367_v28, %v506_v44  ;;  %v3663_v12 = vmov 0 }
  0x99   : > { %v3665_v15 = vmov 0 }
  0x9a   : > { %v2446_v60 = vpop.permute.xlu0 %605 }
  0x9c   : > { %v549_v43 = vpop.permute.xlu1 %548 }
  0x9d   : > { %v551_v30 = vsel %vm3655_vm4, %v2389_v39, %v549_v43  ;;  %v552_v32 = vsel %vm3656_vm3, %v549_v43, %v2389_v39  ;;  %vm3660_vm4 = vmmov %vm3659_vm0  ;;  %v628_v39 = vrot.slane %v620_v19, %v2424_v52  ;;  %v505_v43 = vsel %vm2464_vm11, %v492_v25, 0.0 }
  0x9e   : > { %vm677_vm3 = vmand %vm2451_vm7, %vm2403_vm13  ;;  %v565_v49 = vsel %vm2494_vm6, %v552_v32, 0.0  ;;  %v513_v63 = vmul.f32 %v2367_v28, %v505_v43  ;;  %v545_v28 = vadd.f32 %v543_v54, %v514_v1  ;;  %v3678_v1 = vmov 0 }
  0x9f   : > { %v2498_v18 = vpop.permute.xlu0 %634  ;;  %v678_v62 = vsel %vm677_vm3, 1, %v3596_v2  ;;  %v571_v36 = vmul.f32 %v2357_v24, %v565_v49  ;;  %vm706_vm3 = vmand %vm2451_vm7, %vm2407_vm14 }
  0xa0   : > { %v576_v50 = vpop.permute.xlu1 %575  ;;  %v682_v32 = vrot.slane %v678_v62, %v2422_v51 }
  0xa3   : > { %v615_v55 = vpop.permute.xlu0 %614 }
  0xa4   : > { %v578_v56 = vpop.permute.xlu1 %577 }
  0xa5   : > { %v580_v31 = vsel %vm3659_vm0, %v576_v50, %v578_v56  ;;  %v581_v41 = vsel %vm3660_vm4, %v578_v56, %v576_v50  ;;  %v566_v50 = vsel %vm2501_vm10, %v551_v30, 0.0  ;;  %vm2565_vm0 = vcmp.eq.s32.totalorder %v624_v26, 1 }
  0xa6   : > { %v594_v58 = vsel %vm2506_vm15, %v581_v41, 0.0  ;;  %v595_v59 = vsel %vm2529_vm8, %v580_v31, 0.0  ;;  %v572_v4 = vmul.f32 %v2357_v24, %v566_v50  ;;  %v3662_v5 = vsel %vm2565_vm0, 4294967295, %v3661_v5 }
  0xa7   : > { %vm2569_vm4 = vcmp.eq.s32.totalorder %v628_v39, 1  ;;  %vm2574_vm8 = vcmp.eq.s32.totalorder %v653_v42, 1  ;;  %v544_v24 = vadd.f32 %v542_v53, %v513_v63  ;;  %v600_v16 = vmul.f32 %v2411_v47, %v594_v58  ;;  %v642_v26 = vpop.permute.xlu0 %641 }
  0xa8   : > { %v3664_v12 = vsel %vm2569_vm4, 4294967295, %v3663_v12  ;;  %v3666_v15 = vsel %vm2574_vm8, 4294967295, %v3665_v15  ;;  %v601_v19 = vmul.f32 %v2411_v47, %v595_v59  ;;  %vm3668_vm15 = vcmp.lt.s32.totalorder %v2442_v57, 127 }
  0xa9   : > { %v2472_v9 = vpop.permute.xlu1 %663  ;;  %3667 = vst [vmem:[#allocation5_spill] sm:$0xff] %v3666_v15  ;;  %vm3669_vm9 = vmmov %vm3668_vm15  ;;  %vm2588_vm10 = vcmp.eq.s32.totalorder %v657_v61, 1  ;;  %v3670_v30 = vmov 0  ;;  %v573_v34 = vadd.f32 %v571_v36, %v544_v24  ;;  %v574_v35 = vadd.f32 %v572_v4, %v545_v28 }
  0xaa   : > { %v3671_v30 = vsel %vm2588_vm10, 4294967295, %v3670_v30  ;;  %v686_v31 = vrot.slane %v678_v62, %v2424_v52  ;;  %v707_v47 = vsel %vm706_vm3, 1, %v3596_v2  ;;  %v608_v41 = vmul.f32 %v2446_v60, %v2285_v3 }
  0xab   : > { %3672 = vst [vmem:[#allocation6_spill] sm:$0xff] %v3671_v30  ;;  %v609_v39 = vmul.f32 %v2446_v60, %v2290_v6  ;;  %v602_v43 = vadd.f32 %v600_v16, %v573_v34  ;;  %v603_v44 = vadd.f32 %v601_v19, %v574_v35  ;;  %v711_v58 = vrot.slane %v707_v47, %v2422_v51 }
  0xac   : > { %v715_v59 = vrot.slane %v707_v47, %v2424_v52  ;;  %v3675_v63 = vmov 0 }
  0xad   : > { %v613_v33 = vpop.permute.xlu1 %612  ;;  %v610_v36 = vadd.f32 %v608_v41, %v602_v43  ;;  %v611_v4 = vadd.f32 %v609_v39, %v603_v44  ;;  %vm2635_vm7 = vcmp.eq.s32.totalorder %v711_v58, 1 }
  0xae   : > { %v617_v23 = vsel %vm3668_vm15, %v613_v33, %v615_v55  ;;  %v618_v25 = vsel %vm3669_vm9, %v615_v55, %v613_v33  ;;  %vm3673_vm15 = vcmp.lt.s32.totalorder %v2442_v57, 113  ;;  %v722_v55 = vpop.permute.xlu0 %721  ;;  %vm2639_vm3 = vcmp.eq.s32.totalorder %v715_v59, 1 }
  0xaf   : > { %vm3674_vm9 = vmmov %vm3673_vm15  ;;  %v631_v49 = vsel %vm2565_vm0, %v617_v23, 0.0  ;;  %v632_v50 = vsel %vm2569_vm4, %v618_v25, 0.0  ;;  %v3683_v25 = vmov 0 }
  0xb0   : > { %v637_v61 = vmul.f32 %v2498_v18, %v631_v49  ;;  %v638_v62 = vmul.f32 %v2498_v18, %v632_v50  ;;  %v3684_v25 = vsel %vm2635_vm7, 4294967295, %v3683_v25 }
  0xb1   : > { %v693_v56 = vpop.permute.xlu1 %692  ;;  %3685 = vst [vmem:[#allocation9_spill] sm:$0xff] %v3684_v25 }
  0xb2   : > { %v640_v34 = vadd.f32 %v638_v62, %v611_v4  ;;  %v738_v4 = vld [vmem:[%s3560_s4] sm:$0xff] }
  0xb5   : > { %v644_v22 = vpop.permute.xlu1 %643 }
  0xb6   : > { %v646_v33 = vsel %vm3673_vm15, %v642_v26, %v644_v22  ;;  %v647_v42 = vsel %vm3674_vm9, %v644_v22, %v642_v26  ;;  %vm2616_vm15 = vcmp.eq.s32.totalorder %v682_v32, 1  ;;  %vm2620_vm9 = vcmp.eq.s32.totalorder %v686_v31, 1  ;;  %v700_v31 = vpop.permute.xlu0 %699 }
  0xb7   : > { %v660_v60 = vsel %vm2574_vm8, %v646_v33, 0.0  ;;  %v661_v54 = vsel %vm2588_vm10, %v647_v42, 0.0  ;;  %v3676_v63 = vsel %vm2616_vm15, 4294967295, %v3675_v63  ;;  %v3679_v1 = vsel %vm2620_vm9, 4294967295, %v3678_v1 }
  0xb8   : > { %3677 = vst [vmem:[#allocation7_spill] sm:$0xff] %v3676_v63  ;;  %3680 = vst [vmem:[#allocation8_spill] sm:$0xff] %v3679_v1  ;;  %v666_v28 = vmul.f32 %v2472_v9, %v660_v60  ;;  %v667_v16 = vmul.f32 %v2472_v9, %v661_v54  ;;  %vm3681_vm10 = vcmp.lt.s32.totalorder %v2442_v57, 112  ;;  %v3686_v32 = vmov 0 }
  0xb9   : > { %v671_v53 = vpop.permute.xlu1 %670  ;;  %vm3682_vm8 = vmmov %vm3681_vm10  ;;  %v3687_v32 = vsel %vm2639_vm3, 4294967295, %v3686_v32  ;;  %v639_v9 = vadd.f32 %v637_v61, %v610_v36  ;;  %v3716_v1 = vmov 0  }
  0xba   : > { %3688 = vst [vmem:[#allocation10_spill] sm:$0xff] %v3687_v32  ;;  %v669_v39 = vadd.f32 %v667_v16, %v640_v34  ;;  %v734_v58 = vpop.permute.xlu0 %733 }
  0xbb   : > { %v668_v41 = vadd.f32 %v666_v28, %v639_v9  ;;  %v2184_v9 = vmov 23  }
  0xbd   : > { %v673_v24 = vpop.permute.xlu1 %672 }
  0xbe   : > { %v675_v18 = vsel %vm3681_vm10, %v671_v53, %v673_v24  ;;  %v676_v19 = vsel %vm3682_vm8, %v673_v24, %v671_v53  ;;  %vm3689_vm10 = vcmp.lt.s32.totalorder %v2442_v57, 111 }
  0xbf   : > { %v689_v22 = vsel %vm2616_vm15, %v675_v18, 0.0  ;;  %v690_v23 = vsel %vm2620_vm9, %v676_v19, 0.0  ;;  %vm3690_vm8 = vmmov %vm3689_vm10  ;;  %v2181_v18 = vmov 21   ;;  %v2690_v19 = vpop.permute.xlu0 %873 }
  0xc0   : > { %v695_v35 = vmul.f32 %v693_v56, %v689_v22  ;;  %v696_v26 = vmul.f32 %v693_v56, %v690_v23  ;;  %v2182_v22 = vmov 22  }
  0xc1   : > { %v702_v47 = vpop.permute.xlu1 %701 }
  0xc2   : > { %v704_v33 = vsel %vm3689_vm10, %v700_v31, %v702_v47  ;;  %v705_v42 = vsel %vm3690_vm8, %v702_v47, %v700_v31  ;;  %v698_v53 = vadd.f32 %v696_v26, %v669_v39  ;;  %v697_v56 = vadd.f32 %v695_v35, %v668_v41 }
  0xc3   : > { %v718_v43 = vsel %vm2635_vm7, %v704_v33, 0.0  ;;  %v719_v44 = vsel %vm2639_vm3, %v705_v42, 0.0  ;;  %vm3586_vm10 = vcmask 64512   ;;  %v2695_v23 = vpop.permute.xlu0 %960  ;;  %v2186_v35 = vmov 24  }
  0xc4   : > { %v724_v49 = vmul.f32 %v722_v55, %v718_v43  ;;  %v725_v50 = vmul.f32 %v722_v55, %v719_v44 }
  0xc6   : > { %v727_v60 = vadd.f32 %v725_v50, %v698_v53  ;;  %v726_v54 = vadd.f32 %v724_v49, %v697_v56 }
  0xc7   : > { %v2702_v34 = vpop.permute.xlu0 %989 }
  0xc8   : > { %v729_v59 = vadd.f32 %v727_v60, %v2290_v6  ;;  %v728_v61 = vadd.f32 %v726_v54, %v2285_v3  ;;  %v2173_v6 = vmov 20   ;;  %v743_v3 = vpop.permute.xlu1 %742  ;;  %v444_v54 = vadd.s32 4294967294, %v2365_v27 }
  0xc9   : > { %2096 = vset.pattern.permute.xlu0 %v2173_v6 }
  0xca   : > { %v2653_v62 = vadd.f32 %v734_v58, %v729_v59  ;;  %v2655_v36 = vadd.f32 %v734_v58, %v728_v61  ;;  %v463_v58 = vadd.s32 4294967294, %v2372_v29  ;;  %vm445_vm8 = vcmp.ge.s32.totalorder %v444_v54, 0 }
  0xcb   : > { %v2709_v26 = vpop.permute.xlu0 %1005 }
  0xcc   : > { %3691 = vst [vmem:[#allocation11_spill] sm:$0xff] %v2653_v62  ;;  %3692 = vst [vmem:[#allocation12_spill] sm:$0xff] %v2655_v36  ;;  %779 = vmatprep.subr.mxu1 %v2653_v62  ;;  %v845_v43 = vpop.permute.xlu1 %844  ;;  %vm464_vm3 = vcmp.ge.s32.totalorder %v463_v58, 0  ;;  %vm465_vm7 = vcmp.lt.s32.totalorder %v463_v58, 16 }
  0xcd   : > { %780 = vmatpush1.msra.mxu1 %v2655_v36  ;;  %vm2782_vm15 = vmand %vm464_vm3, %vm465_vm7  ;;  %vm824_vm3 = vcmp.lt.s32.totalorder %v2442_v57, 34 }
  0xce   : > { %1997 = vmatmul.mubr.msk.f32.vlgmr.msra.gmra.mxu1 %vm3586_vm10, %v738_v4  ;;  %vm446_vm10 = vcmp.lt.s32.totalorder %v444_v54, 16 }
  0xcf   : > { %1490 = vmatprep.mubr.f32.mxu1 %v3592_v13  ;;  %v2716_v31 = vpop.permute.xlu0 %1021  ;;  %vm2778_vm9 = vmand %vm445_vm8, %vm446_vm10  ;;  %vm855_vm8 = vcmp.lt.s32.totalorder %v2442_v57, 33 }
  0xd0   : > { %v2750_v44 = vpop.permute.xlu1 %902  ;;  %vm827_vm4 = vmand %vm2778_vm9, %vm2782_vm15 }
  0xd1   : > { %vm858_vm7 = vmand %vm2778_vm9, %vm2391_vm5 }
  0xd4   : > { %v2758_v50 = vpop.permute.xlu1 %931 }
  0xd8   : > { %v2764_v56 = vpop.permute.xlu1 %1164 }
  0xd9   : > { %3695 = vst [vmem:[#allocation15_spill] sm:$0xff] %v2764_v56 }
  0xdd   : > { %v2776_v61 = vpop.permute.xlu1 %1193 }
  0xde   : > { %3699 = vst [vmem:[#allocation18_spill] sm:$0xff] %v2776_v61 }
 0x18e   : > { %v815_v55 = vpop.f32.mrf.mxu1 }
 0x18f   : > { %v2664_v24 = vadd.f32 %v815_v55, %v743_v3  ;;  %v828_v55 = vsel %vm827_vm4, 1, %v3596_v2 }
 0x190   : > { %v817_v28 = vpop.f32.mrf.mxu1 }
 0x191   : > { %880 = vrot.lane.b32.xlu0 %v2664_v24, %s2174_s23  ;;  %820 = vrot.lane.b32.xlu1 %v2664_v24, %s2175_s24  ;;  %v2672_v16 = vadd.f32 %v817_v28, %v743_v3 }
 0x195   : > { %1142 = vrot.lane.b32.xlu0 %v2664_v24, %s3583_s28  ;;  %851 = vrot.lane.b32.xlu1 %v2664_v24, %s2177_s30  ;;  %s3585_s28 = smov 94  }
 0x199   : > { %822 = vrot.lane.b32.xlu0 %v2672_v16, %s2175_s24  ;;  %909 = vrot.lane.b32.xlu1 %v2664_v24, %s2178_s14  ;;  %s2183_s24 = smov 14  }
 0x19d   : > { %853 = vrot.lane.b32.xlu0 %v2672_v16, %s2177_s30  ;;  %938 = vrot.lane.b32.xlu1 %v2664_v24, %s2179_s15  ;;  %s3584_s30 = smov 2  }
 0x1a1   : > { %1299 = vperm.xlu0 %2096, %v2332_v14   ;;  %967 = vrot.lane.b32.xlu1 %v2664_v24, %s2180_s29 }
 0x1a5   : > { %2097 = vset.pattern.permute.xlu0 %v2181_v18  ;;  %996 = vrot.lane.b32.xlu1 %v2664_v24, %s2148_s16 }
 0x1a6   : > { %1328 = vperm.xlu0 %2097, %v2332_v14  }
 0x1a9   : > { %1012 = vrot.lane.b32.xlu1 %v2664_v24, %s2149_s17 }
 0x1aa   : > { %1128 = vrot.lane.b32.xlu0 %v2672_v16, %s2155_s20 }
 0x1ab   : > { %2098 = vset.pattern.permute.xlu0 %v2182_v22  ;;  %v859_v22 = vsel %vm858_vm7, 1, %v3596_v2 }
 0x1ac   : > { %v863_v54 = vrot.slane %v859_v22, %v2422_v51  ;;  %v867_v58 = vrot.slane %v859_v22, %v2424_v52 }
 0x1ad   : > { %1028 = vrot.lane.b32.xlu1 %v2664_v24, %s2151_s18 }
 0x1ae   : > { %1357 = vperm.xlu0 %2098, %v2332_v14   ;;  %vm868_vm7 = vcmp.eq.s32.totalorder %v863_v54, 1  ;;  %vm869_vm5 = vcmp.eq.s32.totalorder %v867_v58, 1 }
 0x1b1   : > { %1044 = vrot.lane.b32.xlu1 %v2664_v24, %s2183_s24 }
 0x1b2   : > { %2099 = vset.pattern.permute.xlu0 %v2184_v9  ;;  %v832_v9 = vrot.slane %v828_v55, %v2422_v51 }
 0x1b3   : > { %1386 = vperm.xlu0 %2099, %v2332_v14  }
 0x1b4   : > { %vm2813_vm4 = vcmp.eq.s32.totalorder %v832_v9, 1 }
 0x1b5   : > { %1073 = vrot.lane.b32.xlu1 %v2664_v24, %s3584_s30  ;;  %s2188_s30 = smov 114  }
 0x1b7   : > { %2100 = vset.pattern.permute.xlu0 %v2186_v35  ;;  %v836_v35 = vrot.slane %v828_v55, %v2424_v52 }
 0x1b8   : > { %1415 = vperm.xlu0 %2100, %v2332_v14   ;;  %v2720_v14 = vpop.permute.xlu0 %1037 }
 0x1b9   : > { %1102 = vrot.lane.b32.xlu1 %v2664_v24, %s2154_s19  ;;  %vm2817_vm10 = vcmp.eq.s32.totalorder %v836_v35, 1 }
 0x1bc   : > { %1393 = vrot.lane.b32.xlu0 %v2664_v24, %s3585_s28  ;;  %v2726_v47 = vpop.permute.xlu0 %1066  ;;  %s2190_s28 = smov 98  }
 0x1bd   : > { %1126 = vrot.lane.b32.xlu1 %v2664_v24, %s2155_s20  ;;  %2101 = vset.pattern.permute.xlu0 %v3596_v2  ;;  %s2189_s20 = smov 110  }
 0x1c0   : > { %v2730_v41 = vpop.permute.xlu0 %1095 }
 0x1c1   : > { %1171 = vrot.lane.b32.xlu1 %v2664_v24, %s2188_s30 }
 0x1c4   : > { %v2736_v39 = vpop.permute.xlu0 %1111 }
 0x1c5   : > { %1200 = vrot.lane.b32.xlu1 %v2664_v24, %s2157_s21 }
 0x1c8   : > { %v2740_v33 = vpop.permute.xlu0 %1119 }
 0x1c9   : > { %1216 = vrot.lane.b32.xlu1 %v2664_v24, %s2160_s27 }
 0x1cc   : > { %v2746_v42 = vpop.permute.xlu0 %1135 }
 0x1cd   : > { %1232 = vrot.lane.b32.xlu1 %v2664_v24, %s2159_s22 }
 0x1d0   : > { %v2752_v49 = vpop.permute.xlu0 %1209 }
 0x1d1   : > { %1248 = vrot.lane.b32.xlu1 %v2664_v24, %s2189_s20  ;;  %3693 = vst [vmem:[#allocation13_spill] sm:$0xff] %v2752_v49 }
 0x1d4   : > { %v2760_v53 = vpop.permute.xlu0 %1225 }
 0x1d5   : > { %1277 = vrot.lane.b32.xlu1 %v2664_v24, %s2190_s28  ;;  %3694 = vst [vmem:[#allocation14_spill] sm:$0xff] %v2760_v53 }
 0x1d8   : > { %v2766_v60 = vpop.permute.xlu0 %1241 }
 0x1d9   : > { %882 = vrot.lane.b32.xlu1 %v2672_v16, %s2174_s23  ;;  %3696 = vst [vmem:[#allocation16_spill] sm:$0xff] %v2766_v60 }
 0x1dc   : > { %v2774_v59 = vpop.permute.xlu0 %1270 }
 0x1dd   : > { %911 = vrot.lane.b32.xlu1 %v2672_v16, %s2178_s14  ;;  %3698 = vst [vmem:[#allocation17_spill] sm:$0xff] %v2774_v59 }
 0x1e1   : > { %940 = vrot.lane.b32.xlu1 %v2672_v16, %s2179_s15 }
 0x1e5   : > { %969 = vrot.lane.b32.xlu1 %v2672_v16, %s2180_s29  ;;  %s3697_s29 = smov 2  }
 0x1e9   : > { %998 = vrot.lane.b32.xlu1 %v2672_v16, %s2148_s16  ;;  %s2191_s16 = smov 97  }
 0x1ed   : > { %1014 = vrot.lane.b32.xlu1 %v2672_v16, %s2149_s17  ;;  %s2192_s17 = smov 96  }
 0x1f1   : > { %1030 = vrot.lane.b32.xlu1 %v2672_v16, %s2151_s18  ;;  %s2193_s18 = smov 95  }
 0x1f5   : > { %1046 = vrot.lane.b32.xlu1 %v2672_v16, %s2183_s24 }
 0x1f9   : > { %1075 = vrot.lane.b32.xlu1 %v2672_v16, %s3697_s29 }
 0x1fd   : > { %1104 = vrot.lane.b32.xlu1 %v2672_v16, %s2154_s19  ;;  %s3708_s19 = smov 126  }
 0x201   : > { %1306 = vrot.lane.b32.xlu1 %v2664_v24, %s2191_s16 }
 0x203   : > { %v2792_v6 = vpop.permute.xlu0 %880  ;;  %v821_v3 = vpop.permute.xlu1 %820 }
 0x205   : > { %1335 = vrot.lane.b32.xlu1 %v2664_v24, %s2192_s17 }
 0x207   : > { %v2801_v28 = vpop.permute.xlu0 %1142  ;;  %v852_v18 = vpop.permute.xlu1 %851 }
 0x209   : > { %1364 = vrot.lane.b32.xlu1 %v2664_v24, %s2193_s18 }
 0x20b   : > { %v823_v13 = vpop.permute.xlu0 %822  ;;  %v2811_v62 = vpop.permute.xlu1 %909 }
 0x20c   : > { %v825_v55 = vsel %vm824_vm3, %v821_v3, %v823_v13  ;;  %v826_v59 = vsel %vm824_vm3, %v823_v13, %v821_v3 }
 0x20d   : > { %1144 = vrot.lane.b32.xlu1 %v2672_v16, %s3708_s19  ;;  %v839_v22 = vsel %vm2813_vm4, %v826_v59, 0.0  ;;  %v840_v9 = vsel %vm2817_vm10, %v825_v55, 0.0  ;;  %v1512_v55 = vld [vmem:[%s3566_s10 + $0x8] sm:$0xff] }
 0x20e   : > { %v847_v3 = vmul.f32 %v845_v43, %v839_v22  ;;  %v848_v49 = vmul.f32 %v845_v43, %v840_v9  ;;  %v1922_v9 = vld [vmem:[%s3568_s12] sm:$0xff] }
 0x20f   : > { %v854_v60 = vpop.permute.xlu0 %853  ;;  %v2828_v35 = vpop.permute.xlu1 %938 }
 0x210   : > { %v856_v32 = vsel %vm855_vm8, %v852_v18, %v854_v60  ;;  %v857_v25 = vsel %vm855_vm8, %v854_v60, %v852_v18  ;;  %v1499_v18 = vld [vmem:[%s3564_s8] sm:$0xff]  ;;  %vm916_vm8 = vmand %vm2778_vm9, %vm2407_vm14 }
 0x211   : > { %v870_v53 = vsel %vm868_vm7, %v857_v25, 0.0  ;;  %v871_v13 = vsel %vm869_vm5, %v856_v32, 0.0  ;;  %1173 = vrot.lane.b32.xlu1 %v2672_v16, %s2188_s30  ;;  %1502 = vperm.xlu0 %2101, %v1499_v18   ;;  %vm887_vm5 = vmand %vm2778_vm9, %vm2403_vm13 }
 0x212   : > { %v876_v54 = vmul.f32 %v2690_v19, %v870_v53  ;;  %v877_v36 = vmul.f32 %v2690_v19, %v871_v13  ;;  %v888_v63 = vsel %vm887_vm5, 1, %v3716_v1  ;;  %vm884_vm5 = vcmp.lt.s32.totalorder %v2442_v57, 32 }
 0x213   : > { %v2834_v59 = vpop.permute.xlu1 %967 }
 0x214   : > { %v2836_v2 = vadd.f32 %v876_v54, %v847_v3  ;;  %v2838_v58 = vadd.f32 %v877_v36, %v848_v49  ;;  %v478_v36 = vadd.s32 2, %v2372_v29  ;;  %v892_v29 = vrot.slane %v888_v63, %v2422_v51 }
 0x215   : > { %1202 = vrot.lane.b32.xlu1 %v2672_v16, %s2157_s21  ;;  %1522 = vperm.xlu0 %2101, %v1512_v55  }
 0x216   : > { %vm479_vm3 = vcmp.ge.s32.totalorder %v478_v36, 0  ;;  %vm480_vm4 = vcmp.lt.s32.totalorder %v478_v36, 16  ;;  %v896_v36 = vrot.slane %v888_v63, %v2424_v52 }
 0x217   : > { %v2842_v25 = vpop.permute.xlu1 %996  ;;  %vm2899_vm10 = vmand %vm479_vm3, %vm480_vm4  ;;  %vm2916_vm3 = vcmp.eq.s32.totalorder %v892_v29, 1  ;;  %vm3721_vm4 = vnez %v3625_v38 }
 0x218   : > { %vm945_vm7 = vmand %vm2778_vm9, %vm2899_vm10  ;;  %vm2925_vm14 = vcmp.eq.s32.totalorder %v896_v36, 1 }
 0x219   : > { %1218 = vrot.lane.b32.xlu1 %v2672_v16, %s2160_s27  ;;  %1925 = vperm.xlu0 %2101, %v1922_v9   ;;  %vm974_vm9 = vmand %vm3721_vm4, %vm2782_vm15 }
 0x21b   : > { %v2846_v32 = vpop.permute.xlu1 %1012 }
 0x21d   : > { %1234 = vrot.lane.b32.xlu1 %v2672_v16, %s2159_s22 }
 0x21f   : > { %v2850_v19 = vpop.permute.xlu1 %1028 }
 0x221   : > { %1250 = vrot.lane.b32.xlu1 %v2672_v16, %s2189_s20 }
 0x223   : > { %v2854_v43 = vpop.permute.xlu1 %1044 }
 0x225   : > { %1279 = vrot.lane.b32.xlu1 %v2672_v16, %s2190_s28  ;;  %s3710_s28 = smov 94  }
 0x227   : > { %v2858_v49 = vpop.permute.xlu1 %1073 }
 0x229   : > { %1308 = vrot.lane.b32.xlu1 %v2672_v16, %s2191_s16 }
 0x22b   : > { %v2862_v53 = vpop.permute.xlu1 %1102 }
 0x22d   : > { %1337 = vrot.lane.b32.xlu1 %v2672_v16, %s2192_s17  ;;  %s3836_s17 = sshll.u32 %s3838_s26, 4 }
 0x22e   : > { %s440_s21 = scalar_lea.vmem %s3569_s13, %s3836_s17 }
 0x22f   : > { %v2866_v60 = vpop.permute.xlu1 %1126 }
 0x231   : > { %1366 = vrot.lane.b32.xlu1 %v2672_v16, %s2193_s18 }
 0x233   : > { %v2876_v22 = vpop.permute.xlu1 %1171 }
 0x234   : > { %3709 = vst [vmem:[#allocation19_spill] sm:$0xff] %v2876_v22 }
 0x235   : > { %1395 = vrot.lane.b32.xlu1 %v2672_v16, %s3710_s28 }
 0x237   : > { %v2883_v13 = vpop.permute.xlu1 %1200 }
 0x238   : > { %3711 = vst [vmem:[#allocation20_spill] sm:$0xff] %v2883_v13  ;;  %v975_v13 = vsel %vm974_vm9, 1, %v3716_v1  ;;  %vm942_vm9 = vcmp.lt.s32.totalorder %v2442_v57, 30 }
 0x23b   : > { %v2885_v3 = vpop.permute.xlu1 %1216 }
 0x23c   : > { %3712 = vst [vmem:[#allocation21_spill] sm:$0xff] %v2885_v3 }
 0x23f   : > { %v2887_v54 = vpop.permute.xlu1 %1232 }
 0x240   : > { %3713 = vst [vmem:[#allocation22_spill] sm:$0xff] %v2887_v54  ;;  %v946_v54 = vsel %vm945_vm7, 1, %v3716_v1 }
 0x241   : > { %v950_v3 = vrot.slane %v946_v54, %v2422_v51  ;;  %v954_v56 = vrot.slane %v946_v54, %v2424_v52 }
 0x243   : > { %v2890_v18 = vpop.permute.xlu1 %1248  ;;  %vm2951_vm13 = vcmp.eq.s32.totalorder %v950_v3, 1 }
 0x244   : > { %3714 = vst [vmem:[#allocation23_spill] sm:$0xff] %v2890_v18 }
 0x247   : > { %v2896_v55 = vpop.permute.xlu1 %1277 }
 0x248   : > { %3715 = vst [vmem:[#allocation24_spill] sm:$0xff] %v2896_v55  ;;  %v917_v55 = vsel %vm916_vm8, 1, %v3716_v1  ;;  %vm913_vm8 = vcmp.lt.s32.totalorder %v2442_v57, 31 }
 0x249   : > { %v921_v30 = vrot.slane %v917_v55, %v2422_v51  ;;  %v925_v29 = vrot.slane %v917_v55, %v2424_v52 }
 0x24b   : > { %v883_v18 = vpop.permute.xlu1 %882  ;;  %vm2940_vm7 = vcmp.eq.s32.totalorder %v921_v30, 1  ;;  %v979_v30 = vrot.slane %v975_v13, %v2422_v51 }
 0x24c   : > { %v885_v4 = vsel %vm884_vm5, %v2792_v6, %v883_v18  ;;  %v886_v61 = vsel %vm884_vm5, %v883_v18, %v2792_v6  ;;  %vm2944_vm5 = vcmp.eq.s32.totalorder %v925_v29, 1 }
 0x24d   : > { %v899_v36 = vsel %vm2916_vm3, %v886_v61, 0.0  ;;  %v900_v45 = vsel %vm2925_vm14, %v885_v4, 0.0  ;;  %v983_v61 = vrot.slane %v975_v13, %v2424_v52  ;;  %vm2959_vm14 = vcmp.eq.s32.totalorder %v954_v56, 1 }
 0x24e   : > { %v905_v63 = vmul.f32 %v2750_v44, %v899_v36  ;;  %v906_v4 = vmul.f32 %v2750_v44, %v900_v45  ;;  %vm971_vm3 = vcmp.lt.s32.totalorder %v2442_v57, 18  ;;  %vm2974_vm0 = vcmp.eq.s32.totalorder %v979_v30, 1 }
 0x24f   : > { %v912_v15 = vpop.permute.xlu1 %911  ;;  %vm2978_vm6 = vcmp.eq.s32.totalorder %v983_v61, 1 }
 0x250   : > { %v914_v55 = vsel %vm913_vm8, %v2811_v62, %v912_v15  ;;  %v915_v54 = vsel %vm913_vm8, %v912_v15, %v2811_v62  ;;  %vm1051_vm8 = vmand %vm3721_vm4, %vm2899_vm10  ;;  %v907_v18 = vadd.f32 %v905_v63, %v2836_v2  ;;  %vm3736_vm4 = vcmp.lt.s32.totalorder %v2442_v57, 17 }
 0x251   : > { %v928_v15 = vsel %vm2940_vm7, %v915_v54, 0.0  ;;  %v929_v62 = vsel %vm2944_vm5, %v914_v55, 0.0  ;;  %v908_v55 = vadd.f32 %v906_v4, %v2838_v58  ;;  %v1052_v30 = vsel %vm1051_vm8, 1, %v3716_v1 }
 0x252   : > { %v935_v36 = vmul.f32 %v2758_v50, %v929_v62  ;;  %v1056_v4 = vrot.slane %v1052_v30, %v2422_v51  ;;  %v1060_v29 = vrot.slane %v1052_v30, %v2424_v52  ;;  %vm3739_vm7 = vcmp.lt.s32.totalorder %v2442_v57, 16 }
 0x253   : > { %v941_v6 = vpop.permute.xlu1 %940  ;;  %vm3740_vm5 = vmmov %vm3739_vm7  ;;  %vm1077_vm8 = vcmp.lt.s32.totalorder %v2442_v57, 2 }
 0x254   : > { %v943_v3 = vsel %vm942_vm9, %v2828_v35, %v941_v6  ;;  %v944_v13 = vsel %vm942_vm9, %v941_v6, %v2828_v35  ;;  %v934_v35 = vmul.f32 %v2758_v50, %v928_v15  ;;  %v937_v63 = vadd.f32 %v935_v36, %v908_v55 }
 0x255   : > { %v957_v38 = vsel %vm2951_vm13, %v944_v13, 0.0  ;;  %v958_v6 = vsel %vm2959_vm14, %v943_v3, 0.0  ;;  %vm3737_vm13 = vmmov %vm3736_vm4  ;;  %vm3747_vm14 = vnez %v3648_v17 }
 0x256   : > { %v963_v2 = vmul.f32 %v2695_v23, %v957_v38  ;;  %v964_v58 = vmul.f32 %v2695_v23, %v958_v6  ;;  %v936_v61 = vadd.f32 %v934_v35, %v907_v18 }
 0x257   : > { %v970_v40 = vpop.permute.xlu1 %969 }
 0x258   : > { %v972_v56 = vsel %vm971_vm3, %v2834_v59, %v970_v40  ;;  %v973_v22 = vsel %vm971_vm3, %v970_v40, %v2834_v59  ;;  %v965_v45 = vadd.f32 %v963_v2, %v936_v61  ;;  %v966_v7 = vadd.f32 %v964_v58, %v937_v63 }
 0x259   : > { %v986_v40 = vsel %vm2974_vm0, %v973_v22, 0.0  ;;  %v987_v59 = vsel %vm2978_vm6, %v972_v56, 0.0  ;;  %vm3738_vm6 = vnez %v3636_v48  ;;  %v3027_v56 = vpop.permute.xlu0 %1299  ;;  %vm3748_vm3 = vnez %v3650_v20 }
 0x25a   : > { %v992_v15 = vmul.f32 %v2702_v34, %v986_v40  ;;  %v993_v62 = vmul.f32 %v2702_v34, %v987_v59  ;;  %vm1080_vm0 = vmand %vm3738_vm6, %vm2782_vm15 }
 0x25b   : > { %v999_v54 = vpop.permute.xlu1 %998  ;;  %v1081_v36 = vsel %vm1080_vm0, 1, %v3716_v1  ;;  %vm3749_vm0 = vcmp.lt.s32.totalorder %v2442_v57, 127 }
 0x25c   : > { %v1000_v50 = vsel %vm3736_vm4, %v2842_v25, %v999_v54  ;;  %v1001_v46 = vsel %vm3737_vm13, %v999_v54, %v2842_v25  ;;  %v994_v38 = vadd.f32 %v992_v15, %v965_v45  ;;  %v1085_v59 = vrot.slane %v1081_v36, %v2422_v51 }
 0x25d   : > { %v1002_v3 = vsel %vm2464_vm11, %v1001_v46, 0.0  ;;  %v1003_v25 = vsel %vm2468_vm12, %v1000_v50, 0.0  ;;  %vm1048_vm11 = vcmp.lt.s32.totalorder %v2442_v57, 14  ;;  %vm3033_vm12 = vcmp.eq.s32.totalorder %v1056_v4, 1 }
 0x25e   : > { %v1008_v22 = vmul.f32 %v2709_v26, %v1002_v3  ;;  %v1009_v35 = vmul.f32 %v2709_v26, %v1003_v25  ;;  %v1089_v50 = vrot.slane %v1081_v36, %v2424_v52  ;;  %vm1090_vm4 = vcmp.eq.s32.totalorder %v1085_v59, 1 }
 0x25f   : > { %v1015_v13 = vpop.permute.xlu1 %1014 }
 0x260   : > { %v1016_v23 = vsel %vm3739_vm7, %v2846_v32, %v1015_v13  ;;  %v1017_v34 = vsel %vm3740_vm5, %v1015_v13, %v2846_v32  ;;  %v995_v32 = vadd.f32 %v993_v62, %v966_v7  ;;  %v1010_v46 = vadd.f32 %v1008_v22, %v994_v38  ;;  %vm3750_vm7 = vmmov %vm3749_vm0 }
 0x261   : > { %v1018_v8 = vsel %vm2478_vm1, %v1017_v34, 0.0  ;;  %v1019_v44 = vsel %vm2482_vm2, %v1016_v23, 0.0  ;;  %vm3037_vm1 = vcmp.eq.s32.totalorder %v1060_v29, 1  ;;  %vm3745_vm2 = vcmp.lt.s32.totalorder %v2442_v57, 15 }
 0x262   : > { %v1024_v11 = vmul.f32 %v2716_v31, %v1018_v8  ;;  %v1025_v55 = vmul.f32 %v2716_v31, %v1019_v44  ;;  %vm3746_vm9 = vmmov %vm3745_vm2  ;;  %v1011_v31 = vadd.f32 %v1009_v35, %v995_v32  ;;  %vm1091_vm13 = vcmp.eq.s32.totalorder %v1089_v50, 1 }
 0x263   : > { %v1031_v6 = vpop.permute.xlu1 %1030  ;;  %vm3751_vm5 = vcmp.lt.s32.totalorder %v2442_v57, 1 }
 0x264   : > { %v1032_v26 = vsel %vm3745_vm2, %v2850_v19, %v1031_v6  ;;  %v1033_v54 = vsel %vm3746_vm9, %v1031_v6, %v2850_v19  ;;  %v3058_v19 = vpop.permute.xlu0 %1328  ;;  %v1026_v17 = vadd.f32 %v1024_v11, %v1010_v46  ;;  %v1027_v63 = vadd.f32 %v1025_v55, %v1011_v31 }
 0x265   : > { %v1034_v30 = vsel %vm3747_vm14, %v1033_v54, 0.0  ;;  %v1035_v40 = vsel %vm3748_vm3, %v1032_v26, 0.0  ;;  %vm3755_vm2 = vnez %v3662_v5  ;;  %vm3756_vm9 = vnez %v3664_v12  ;;  %vm1149_vm14 = vmand %vm3738_vm6, %vm2899_vm10 }
 0x266   : > { %v1040_v2 = vmul.f32 %v2720_v14, %v1034_v30  ;;  %v1041_v58 = vmul.f32 %v2720_v14, %v1035_v40 }
 0x267   : > { %v1047_v61 = vpop.permute.xlu1 %1046 }
 0x268   : > { %v1049_v20 = vsel %vm1048_vm11, %v2854_v43, %v1047_v61  ;;  %v1050_v4 = vsel %vm1048_vm11, %v1047_v61, %v2854_v43  ;;  %v1042_v15 = vadd.f32 %v1040_v2, %v1026_v17  ;;  %v1043_v62 = vadd.f32 %v1041_v58, %v1027_v63  ;;  %v1129_v44 = vpop.permute.xlu0 %1128  ;;  %vm3752_vm11 = vmmov %vm3751_vm5 }
 0x269   : > { %v1063_v29 = vsel %vm3033_vm12, %v1050_v4, 0.0  ;;  %v1064_v14 = vsel %vm3037_vm1, %v1049_v20, 0.0  ;;  %v1131_v36 = vsel %vm3750_vm7, %v1129_v44, %v2866_v60  ;;  %vm3753_vm12 = vnez %v3652_v21 }
 0x26a   : > { %v1069_v3 = vmul.f32 %v2726_v47, %v1063_v29  ;;  %v1070_v25 = vmul.f32 %v2726_v47, %v1064_v14  ;;  %v1130_v47 = vsel %vm3749_vm0, %v2866_v60, %v1129_v44  ;;  %vm3754_vm1 = vnez %v3658_v37 }
 0x26b   : > { %v1076_v13 = vpop.permute.xlu1 %1075  ;;  %v1132_v55 = vsel %vm3755_vm2, %v1130_v47, 0.0  ;;  %v1133_v26 = vsel %vm3756_vm9, %v1131_v36, 0.0  ;;  %v1123_v21 = vmul.f32 %v2740_v33, %v2672_v16  ;;  %vm1146_vm7 = vcmp.lt.s32.totalorder %v2442_v57, 126  ;;  %v3771_v36 = vld [vmem:[#allocation3_spill] sm:$0xff] }
 0x26c   : > { %v1071_v23 = vadd.f32 %v1069_v3, %v1042_v15  ;;  %v1072_v34 = vadd.f32 %v1070_v25, %v1043_v62  ;;  %v1078_v43 = vsel %vm1077_vm8, %v2858_v49, %v1076_v13  ;;  %v1079_v45 = vsel %vm1077_vm8, %v1076_v13, %v2858_v49 }
 0x26d   : > { %v1092_v7 = vsel %vm1090_vm4, %v1079_v45, 0.0  ;;  %v1093_v8 = vsel %vm1091_vm13, %v1078_v43, 0.0  ;;  %v1138_v40 = vmul.f32 %v2746_v42, %v1132_v55  ;;  %vm3757_vm4 = vnez %v3638_v0  ;;  %v3801_v43 = vld [vmem:[#allocation4_spill] sm:$0xff] }
 0x26e   : > { %v1098_v22 = vmul.f32 %v2730_v41, %v1092_v7  ;;  %v1099_v35 = vmul.f32 %v2730_v41, %v1093_v8  ;;  %vm1178_vm13 = vmand %vm3757_vm4, %vm2782_vm15 }
 0x26f   : > { %v1105_v38 = vpop.permute.xlu1 %1104  ;;  %v1179_v48 = vsel %vm1178_vm13, 1, %v3716_v1  ;;  %vm1255_vm6 = vmand %vm3757_vm4, %vm2899_vm10  ;;  %vm3772_vm4 = vnez %v3771_v36  ;;  %v3808_v36 = vld [vmem:[#allocation23_spill] sm:$0xff] }
 0x270   : > { %v1100_v32 = vadd.f32 %v1098_v22, %v1071_v23  ;;  %v1101_v6 = vadd.f32 %v1099_v35, %v1072_v34  ;;  %v1106_v49 = vsel %vm3751_vm5, %v2862_v53, %v1105_v38  ;;  %v1107_v18 = vsel %vm3752_vm11, %v1105_v38, %v2862_v53  ;;  %v3764_v23 = vld [vmem:[#allocation2_spill] sm:$0xff] }
 0x271   : > { %v1108_v41 = vsel %vm3753_vm12, %v1107_v18, 0.0  ;;  %v1109_v10 = vsel %vm3754_vm1, %v1106_v49, 0.0  ;;  %v1122_v53 = vmul.f32 %v2740_v33, %v2664_v24  ;;  %v2135_v24 = vld [vmem:[%s3557_s1] ss:$2 sm:$0x3]  ;;  %v1183_v20 = vrot.slane %v1179_v48, %v2422_v51 }
 0x272   : > { %v1114_v11 = vmul.f32 %v2736_v39, %v1108_v41  ;;  %v1115_v60 = vmul.f32 %v2736_v39, %v1109_v10  ;;  %v1139_v39 = vmul.f32 %v2746_v42, %v1133_v26  ;;  %v459_v16 = vadd.s32 2, %v2135_v24 }
 0x273   : > { %v3102_v54 = vpop.permute.xlu1 %1306  ;;  %v1150_v42 = vsel %vm1149_vm14, 1, %v3716_v1  ;;  %v1187_v4 = vrot.slane %v1179_v48, %v2424_v52  ;;  %v1256_v29 = vsel %vm1255_vm6, 1, %v3716_v1  ;;  %vm1175_vm12 = vcmp.lt.s32.totalorder %v2442_v57, 114  ;;  %v3793_v48 = vld [vmem:[#allocation7_spill] sm:$0xff] }
 0x274   : > { %v1116_v37 = vadd.f32 %v1114_v11, %v1100_v32  ;;  %v1117_v30 = vadd.f32 %v1115_v60, %v1101_v6  ;;  %vm460_vm3 = vcmp.ge.s32.totalorder %v459_v16, 0  ;;  %vm461_vm8 = vcmp.lt.s32.totalorder %v459_v16, 16  ;;  %v3773_v6 = vld [vmem:[#allocation20_spill] sm:$0xff]  ;;  %v3780_v60 = vld [vmem:[#allocation15_spill] sm:$0xff] }
 0x275   : > { %vm3130_vm0 = vmand %vm460_vm3, %vm461_vm8  ;;  %v1154_v61 = vrot.slane %v1150_v42, %v2422_v51  ;;  %v1158_v17 = vrot.slane %v1150_v42, %v2424_v52  ;;  %v1260_v25 = vrot.slane %v1256_v29, %v2422_v51  ;;  %v1264_v13 = vrot.slane %v1256_v29, %v2424_v52 }
 0x276   : > { %v1124_v59 = vadd.f32 %v1122_v53, %v1116_v37  ;;  %v1125_v5 = vadd.f32 %v1123_v21, %v1117_v30  ;;  %vm1284_vm5 = vmand %vm3130_vm0, %vm2782_vm15  ;;  %vm3765_vm15 = vnez %v3764_v23  ;;  %vm3167_vm9 = vcmp.eq.s32.totalorder %v1183_v20, 1  ;;  %v3781_v53 = vld [vmem:[#allocation21_spill] sm:$0xff] }
 0x277   : > { %v3110_v50 = vpop.permute.xlu1 %1335  ;;  %vm3149_vm11 = vcmp.eq.s32.totalorder %v1154_v61, 1  ;;  %vm3154_vm1 = vcmp.eq.s32.totalorder %v1158_v17, 1  ;;  %v1285_v62 = vsel %vm1284_vm5, 1, %v3716_v1  ;;  %vm1313_vm2 = vmand %vm3130_vm0, %vm3765_vm15  ;;  %vm3171_vm14 = vcmp.eq.s32.totalorder %v1187_v4, 1 }
 0x278   : > { %v3112_v12 = vadd.f32 %v1138_v40, %v1124_v59  ;;  %v3114_v46 = vadd.f32 %v1139_v39, %v1125_v5  ;;  %v1289_v22 = vrot.slane %v1285_v62, %v2422_v51  ;;  %v1293_v35 = vrot.slane %v1285_v62, %v2424_v52  ;;  %vm1342_vm13 = vmand %vm3130_vm0, %vm3772_vm4  ;;  %v3788_v5 = vld [vmem:[#allocation18_spill] sm:$0xff] }
 0x279   : > { %vm1252_vm3 = vcmp.lt.s32.totalorder %v2442_v57, 110  ;;  %vm1281_vm8 = vcmp.lt.s32.totalorder %v2442_v57, 98  ;;  %v1314_v47 = vsel %vm1313_vm2, 1, %v3716_v1  ;;  %vm3774_vm6 = vcmp.lt.s32.totalorder %v2442_v57, 113 }
 0x27a   : > { %vm3200_vm5 = vcmp.eq.s32.totalorder %v1260_v25, 1  ;;  %vm3216_vm15 = vcmp.eq.s32.totalorder %v1289_v22, 1  ;;  %vm3220_vm2 = vcmp.eq.s32.totalorder %v1293_v35, 1  ;;  %v1318_v39 = vrot.slane %v1314_v47, %v2422_v51  ;;  %v3800_v25 = vld [vmem:[#allocation13_spill] sm:$0xff]  ;;  %v3806_v35 = vld [vmem:[#allocation10_spill] sm:$0xff] }
 0x27b   : > { %v3116_v31 = vpop.permute.xlu1 %1364  ;;  %v1343_v59 = vsel %vm1342_vm13, 1, %v3716_v1  ;;  %vm3794_vm4 = vnez %v3793_v48  ;;  %v1322_v29 = vrot.slane %v1314_v47, %v2424_v52  ;;  %vm3798_vm13 = vcmp.lt.s32.totalorder %v2442_v57, 111  ;;  %v1511_v48 = vld [vmem:[%s3566_s10] sm:$0xff] }
 0x27c   : > { %v1347_v34 = vrot.slane %v1343_v59, %v2422_v51 }
 0x27f   : > { %v1145_v33 = vpop.permute.xlu1 %1144 }
 0x280   : > { %v1147_v27 = vsel %vm1146_vm7, %v2801_v28, %v1145_v33  ;;  %v1148_v15 = vsel %vm1146_vm7, %v1145_v33, %v2801_v28  ;;  %v3770_v28 = vld [vmem:[#allocation19_spill] sm:$0xff]  ;;  %vm3775_vm7 = vmmov %vm3774_vm6  ;;  %v3789_v33 = vld [vmem:[#allocation5_spill] sm:$0xff] }
 0x281   : > { %v1161_v8 = vsel %vm3149_vm11, %v1147_v27, 0.0  ;;  %v1162_v44 = vsel %vm3154_vm1, %v1148_v15, 0.0  ;;  %vm3204_vm11 = vcmp.eq.s32.totalorder %v1264_v13, 1  ;;  %v3797_v27 = vld [vmem:[#allocation22_spill] sm:$0xff] }
 0x282   : > { %v1167_v55 = vmul.f32 %v3780_v60, %v1161_v8  ;;  %v1168_v26 = vmul.f32 %v3780_v60, %v1162_v44  ;;  %v3804_v44 = vld [vmem:[#allocation9_spill] sm:$0xff] }
 0x283   : > { %v1174_v2 = vpop.permute.xlu1 %1173 }
 0x284   : > { %v1176_v45 = vsel %vm1175_vm12, %v3770_v28, %v1174_v2  ;;  %v1177_v7 = vsel %vm1175_vm12, %v1174_v2, %v3770_v28  ;;  %vm3782_vm12 = vcmp.lt.s32.totalorder %v2442_v57, 112  ;;  %v3791_v2 = vld [vmem:[#allocation6_spill] sm:$0xff]  ;;  %v1169_v14 = vadd.f32 %v1167_v55, %v3112_v12 }
 0x285   : > { %v1190_v38 = vsel %vm3167_vm9, %v1176_v45, 0.0  ;;  %v1191_v32 = vsel %vm3171_vm14, %v1177_v7, 0.0  ;;  %vm3783_vm1 = vmmov %vm3782_vm12  ;;  %vm3790_vm9 = vnez %v3789_v33  ;;  %vm3792_vm14 = vnez %v3791_v2  ;;  %v3803_v45 = vld [vmem:[#allocation14_spill] sm:$0xff] }
 0x286   : > { %v1196_v24 = vmul.f32 %v3788_v5, %v1190_v38  ;;  %v1197_v16 = vmul.f32 %v3788_v5, %v1191_v32  ;;  %v1170_v0 = vadd.f32 %v1168_v26, %v3114_v46  ;;  %v1351_v12 = vrot.slane %v1343_v59, %v2424_v52  ;;  %v3813_v26 = vld [vmem:[#allocation24_spill] sm:$0xff] }
 0x287   : > { %v1203_v63 = vpop.permute.xlu1 %1202 }
 0x288   : > { %v1204_v49 = vsel %vm3774_vm6, %v3773_v6, %v1203_v63  ;;  %v1205_v18 = vsel %vm3775_vm7, %v1203_v63, %v3773_v6  ;;  %v3795_v63 = vld [vmem:[#allocation8_spill] sm:$0xff]  ;;  %vm1310_vm7 = vcmp.lt.s32.totalorder %v2442_v57, 97  ;;  %v1198_v46 = vadd.f32 %v1196_v24, %v1169_v14 }
 0x289   : > { %v1206_v42 = vsel %vm3790_vm9, %v1204_v49, 0.0  ;;  %v1207_v61 = vsel %vm3792_vm14, %v1205_v18, 0.0  ;;  %vm3796_vm6 = vnez %v3795_v63  ;;  %v1199_v28 = vadd.f32 %v1197_v16, %v1170_v0 }
 0x28a   : > { %v1212_v13 = vmul.f32 %v3800_v25, %v1206_v42  ;;  %v1213_v23 = vmul.f32 %v3800_v25, %v1207_v61  ;;  %vm3805_vm14 = vnez %v3804_v44  ;;  %v1513_v61 = vld [vmem:[%s3566_s10 + $0x10] sm:$0xff] }
 0x28b   : > { %v1219_v3 = vpop.permute.xlu1 %1218 }
 0x28c   : > { %v1220_v21 = vsel %vm3782_vm12, %v3781_v53, %v1219_v3  ;;  %v1221_v37 = vsel %vm3783_vm1, %v1219_v3, %v3781_v53  ;;  %vm3799_vm12 = vmmov %vm3798_vm13  ;;  %v3246_v3 = vpop.permute.xlu0 %1357  ;;  %vm3802_vm1 = vnez %v3801_v43  ;;  %v1214_v60 = vadd.f32 %v1212_v13, %v1198_v46 }
 0x28d   : > { %v1222_v17 = vsel %vm3794_vm4, %v1220_v21, 0.0  ;;  %v1223_v20 = vsel %vm3796_vm6, %v1221_v37, 0.0  ;;  %vm1371_vm9 = vmand %vm3130_vm0, %vm3802_vm1  ;;  %vm3807_vm4 = vnez %v3806_v35  ;;  %vm3268_vm6 = vcmp.eq.s32.totalorder %v1318_v39, 1  ;;  %v3814_v37 = vld [vmem:[#allocation16_spill] sm:$0xff] }
 0x28e   : > { %v1228_v7 = vmul.f32 %v3803_v45, %v1222_v17  ;;  %v1229_v8 = vmul.f32 %v3803_v45, %v1223_v20  ;;  %v1215_v55 = vadd.f32 %v1213_v23, %v1199_v28  ;;  %vm3298_vm1 = vcmp.eq.s32.totalorder %v1351_v12, 1  ;;  %v3819_v17 = vld [vmem:[#allocation17_spill] sm:$0xff] }
 0x28f   : > { %v1235_v41 = vpop.permute.xlu1 %1234 }
 0x290   : > { %v1236_v15 = vsel %vm3798_vm13, %v3797_v27, %v1235_v41  ;;  %v1237_v62 = vsel %vm3799_vm12, %v1235_v41, %v3797_v27  ;;  %vm3272_vm13 = vcmp.eq.s32.totalorder %v1322_v29, 1  ;;  %vm1339_vm12 = vcmp.lt.s32.totalorder %v2442_v57, 96  ;;  %v1387_v16 = vpop.permute.xlu0 %1386 }
 0x291   : > { %v1238_v22 = vsel %vm3805_vm14, %v1236_v15, 0.0  ;;  %v1239_v47 = vsel %vm3807_vm4, %v1237_v62, 0.0  ;;  %v1372_v41 = vsel %vm1371_vm9, 1, %v3716_v1  ;;  %v1230_v33 = vadd.f32 %v1228_v7, %v1214_v60 }
 0x292   : > { %v1244_v39 = vmul.f32 %v3814_v37, %v1238_v22  ;;  %v1245_v59 = vmul.f32 %v3814_v37, %v1239_v47  ;;  %v1231_v42 = vadd.f32 %v1229_v8, %v1215_v55  ;;  %v1380_v40 = vrot.slane %v1372_v41, %v2424_v52 }
 0x293   : > { %v1251_v4 = vpop.permute.xlu1 %1250 }
 0x294   : > { %v1253_v38 = vsel %vm1252_vm3, %v3808_v36, %v1251_v4  ;;  %v1254_v32 = vsel %vm1252_vm3, %v1251_v4, %v3808_v36  ;;  %vm1400_vm3 = vmand %vm3130_vm0, %vm2899_vm10  ;;  %v1376_v4 = vrot.slane %v1372_v41, %v2422_v51  ;;  %v1246_v29 = vadd.f32 %v1244_v39, %v1230_v33 }
 0x295   : > { %v1267_v5 = vsel %vm3200_vm5, %v1253_v38, 0.0  ;;  %v1268_v24 = vsel %vm3204_vm11, %v1254_v32, 0.0  ;;  %v1401_v30 = vsel %vm1400_vm3, 1, %v3716_v1  ;;  %v1247_v14 = vadd.f32 %v1245_v59, %v1231_v42  ;;  %v1422_v42 = vld [vmem:[%s3563_s7] sm:$0xff] }
 0x296   : > { %v1273_v63 = vmul.f32 %v3819_v17, %v1267_v5  ;;  %v1274_v20 = vmul.f32 %v3819_v17, %v1268_v24  ;;  %vm1368_vm10 = vcmp.lt.s32.totalorder %v2442_v57, 95  ;;  %v1405_v13 = vrot.slane %v1401_v30, %v2422_v51  ;;  %v3831_v17 = vld [vmem:[#allocation11_spill] sm:$0xff] }
 0x297   : > { %v1280_v6 = vpop.permute.xlu1 %1279  ;;  %v1409_v23 = vrot.slane %v1401_v30, %v2424_v52  ;;  %vm3338_vm0 = vcmp.eq.s32.totalorder %v1376_v4, 1  ;;  %vm3342_vm5 = vcmp.eq.s32.totalorder %v1380_v40, 1  ;;  %vm1397_vm11 = vcmp.lt.s32.totalorder %v2442_v57, 94  ;;  %v1509_v40 = vld [vmem:[%s3565_s9 + $0x10] sm:$0xff] }
 0x298   : > { %v1282_v53 = vsel %vm1281_vm8, %v3813_v26, %v1280_v6  ;;  %v1283_v21 = vsel %vm1281_vm8, %v1280_v6, %v3813_v26  ;;  %vm3294_vm8 = vcmp.eq.s32.totalorder %v1347_v34, 1  ;;  %v1275_v34 = vadd.f32 %v1273_v63, %v1246_v29  ;;  %v1507_v29 = vld [vmem:[%s3565_s9] sm:$0xff] }
 0x299   : > { %v1296_v10 = vsel %vm3216_vm15, %v1282_v53, 0.0  ;;  %v1297_v9 = vsel %vm3220_vm2, %v1283_v21, 0.0  ;;  %v1276_v12 = vadd.f32 %v1274_v20, %v1247_v14  ;;  %vm3359_vm15 = vcmp.eq.s32.totalorder %v1405_v13, 1  ;;  %v1508_v14 = vld [vmem:[%s3565_s9 + $0x8] sm:$0xff] }
 0x29a   : > { %v1302_v0 = vmul.f32 %v3027_v56, %v1296_v10  ;;  %v1303_v27 = vmul.f32 %v3027_v56, %v1297_v9  ;;  %v1416_v56 = vpop.permute.xlu0 %1415  ;;  %vm3363_vm2 = vcmp.eq.s32.totalorder %v1409_v23, 1  ;;  %v3829_v57 = vmov 0.0   ;;  %v3830_v9 = vld [vmem:[#allocation12_spill] sm:$0xff] }
 0x29b   : > { %v1309_v2 = vpop.permute.xlu1 %1308 }
 0x29c   : > { %v1311_v58 = vsel %vm1310_vm7, %v3102_v54, %v1309_v2  ;;  %v1312_v11 = vsel %vm1310_vm7, %v1309_v2, %v3102_v54  ;;  %v1304_v52 = vadd.f32 %v1302_v0, %v1275_v34  ;;  %vm3828_vm7 = vcmask 64512   ;;  %v1514_v2 = vld [vmem:[%s3566_s10 + $0x18] sm:$0xff] }
 0x29d   : > { %v1325_v54 = vsel %vm3268_vm6, %v1311_v58, 0.0  ;;  %v1326_v15 = vsel %vm3272_vm13, %v1312_v11, 0.0  ;;  %1532 = vperm.xlu1 %2102, %v1514_v2   ;;  %vm3832_vm9 = vmmov %vm3828_vm7  ;;  %v1510_v0 = vld [vmem:[%s3565_s9 + $0x18] sm:$0xff] }
 0x29e   : > { %v1331_v28 = vmul.f32 %v3058_v19, %v1325_v54  ;;  %v1332_v45 = vmul.f32 %v3058_v19, %v1326_v15  ;;  %v1394_v41 = vpop.permute.xlu0 %1393  ;;  %vm3833_vm14 = vmmov %vm3828_vm7 }
 0x29f   : > { %v1338_v62 = vpop.permute.xlu1 %1337  ;;  %vm3834_vm4 = vmmov %vm3828_vm7 }
 0x2a0   : > { %v1340_v1 = vsel %vm1339_vm12, %v3110_v50, %v1338_v62  ;;  %v1341_v25 = vsel %vm1339_vm12, %v1338_v62, %v3110_v50  ;;  %v1305_v50 = vadd.f32 %v1303_v27, %v1276_v12  ;;  %v1333_v32 = vadd.f32 %v1331_v28, %v1304_v52  ;;  %vm3835_vm6 = vmmov %vm3834_vm4 }
 0x2a1   : > { %v1354_v43 = vsel %vm3294_vm8, %v1340_v1, 0.0  ;;  %v1355_v46 = vsel %vm3298_vm1, %v1341_v25, 0.0  ;;  %1527 = vperm.xlu1 %2102, %v1513_v61  }
 0x2a2   : > { %v1360_v44 = vmul.f32 %v3246_v3, %v1354_v43  ;;  %v1361_v22 = vmul.f32 %v3246_v3, %v1355_v46  ;;  %v1334_v6 = vadd.f32 %v1332_v45, %v1305_v50  ;;  %v1503_v20 = vpop.permute.xlu0 %1502 }
 0x2a3   : > { %v1367_v8 = vpop.permute.xlu1 %1366 }
 0x2a4   : > { %v1369_v19 = vsel %vm1368_vm10, %v3116_v31, %v1367_v8  ;;  %v1370_v35 = vsel %vm1368_vm10, %v1367_v8, %v3116_v31  ;;  %v1362_v60 = vadd.f32 %v1360_v44, %v1333_v32  ;;  %v1363_v55 = vadd.f32 %v1361_v22, %v1334_v6 }
 0x2a5   : > { %v1383_v47 = vsel %vm3338_vm0, %v1369_v19, 0.0  ;;  %v1384_v36 = vsel %vm3342_vm5, %v1370_v35, 0.0  ;;  %1517 = vperm.xlu1 %2102, %v1511_v48  }
 0x2a6   : > { %v1389_v49 = vmul.f32 %v1387_v16, %v1383_v47  ;;  %v1390_v18 = vmul.f32 %v1387_v16, %v1384_v36  ;;  %v1523_v34 = vpop.permute.xlu0 %1522 }
 0x2a7   : > { %v1396_v31 = vpop.permute.xlu1 %1395 }
 0x2a8   : > { %v1398_v26 = vsel %vm1397_vm11, %v1394_v41, %v1396_v31  ;;  %v1399_v53 = vsel %vm1397_vm11, %v1396_v31, %v1394_v41  ;;  %v1391_v39 = vadd.f32 %v1389_v49, %v1362_v60  ;;  %v1392_v59 = vadd.f32 %v1390_v18, %v1363_v55 }
 0x2a9   : > { %v1412_v21 = vsel %vm3359_vm15, %v1398_v26, 0.0  ;;  %v1413_v37 = vsel %vm3363_vm2, %v1399_v53, 0.0  ;;  %vm1845_vm11 = vcmask 261120  }
 0x2aa   : > { %v1418_v5 = vmul.f32 %v1416_v56, %v1412_v21  ;;  %v1419_v24 = vmul.f32 %v1416_v56, %v1413_v37 }
 0x2ac   : > { %v1420_v16 = vadd.f32 %v1418_v5, %v1391_v39  ;;  %v1421_v33 = vadd.f32 %v1419_v24, %v1392_v59 }
 0x2ae   : > { %1456 = vmatprep.subr.mxu1 %v1421_v33 }
 0x2af   : > { %1457 = vmatpush1.msra.mxu1 %v1420_v16 }
 0x2b0   : > { %1998 = vmatmul.mubr.msk.f32.vlgmr.msra.gmra.mxu1 %vm3828_vm7, %v1422_v42 }
 0x2b1   : > { %1913 = vmatprep.mubr.f32.mxu1 %v3829_v57 }
 0x318   : > { %v1533_v27 = vpop.permute.xlu1 %1532 }
 0x31c   : > { %v1528_v54 = vpop.permute.xlu1 %1527 }
 0x320   : > { %v1518_v15 = vpop.permute.xlu1 %1517 }
 0x370   : > { %v1492_v10 = vpop.f32.mrf.mxu1 }
 0x371   : > { %v1497_v58 = vadd.f32 %v1492_v10, %v3830_v9 }
 0x372   : > { %v1494_v11 = vpop.f32.mrf.mxu1 }
 0x373   : > { %v1498_v63 = vadd.f32 %v1494_v11, %v3831_v17  ;;  %v3393_v30 = vadd.f32 %v1503_v20, %v1497_v58 }
 0x375   : > { %v3391_v4 = vadd.f32 %v1503_v20, %v1498_v63 }
 0x377   : > { %1577 = vmatprep.subr.mxu0 %v3391_v4 }
 0x378   : > { %1578 = vmatpush1.msra.mxu0 %v3393_v30 }
 0x379   : > { %1999 = vmatmul.mubr.msk.f32.vlgmr.msra.gmra.mxu0 %vm3832_vm9, %v1507_v29 }
 0x37a   : > { %1617 = vmatprep.mubr.f32.mxu0 %v3829_v57 }
 0x37d   : > { %2000 = vmatmul.mubr.msk.f32.gmra.mxu0 %vm3833_vm14, %v1508_v14 }
 0x37e   : > { %1623 = vmatprep.mubr.f32.mxu0 %v3829_v57 }
 0x381   : > { %2001 = vmatmul.mubr.msk.f32.gmra.mxu0 %vm3834_vm4, %v1509_v40 }
 0x382   : > { %1629 = vmatprep.mubr.f32.mxu0 %v3829_v57 }
 0x385   : > { %2002 = vmatmul.mubr.msk.f32.gmra.mxu0 %vm3835_vm6, %v1510_v0 }
 0x439   : > { %v1613_v62 = vpop.f32.mrf.mxu0 }
 0x43a   : > { %v3416_v1 = vadd.f32 %v1613_v62, %v1518_v15 }
 0x43b   : > { %v1615_v25 = vpop.f32.mrf.mxu0 }
 0x43c   : > { %v3419_v13 = vmul.f32 0.70710677, %v3416_v1  ;;  %v3421_v23 = vadd.f32 %v1615_v25, %v1518_v15 }
 0x43d   : > { %v1619_v56 = vpop.f32.mrf.mxu0 }
 0x43e   : > { %v1652_v12 = vand.u32 2147483647, %v3419_v13  ;;  %v3425_v43 = vmul.f32 0.70710677, %v3421_v23  ;;  %v3427_v46 = vadd.f32 %v1619_v56, %v1523_v34  ;;  %vm1804_vm5 = vcmp.ge.f32.partialorder %v3419_v13, 0.0 }
 0x43f   : > { %v1621_v28 = vpop.f32.mrf.mxu0 }
 0x440   : > { %v1660_v45 = vmul.f32 0.3275911, %v1652_v12  ;;  %v3430_v7 = vand.u32 2147483647, %v3425_v43  ;;  %v3433_v51 = vmul.f32 0.70710677, %v3427_v46  ;;  %v3435_v52 = vadd.f32 %v1621_v28, %v1523_v34 }
 0x441   : > { %v1625_v50 = vpop.f32.mrf.mxu0  ;;  %v1756_v58 = vsub.f32 0.0, %v1652_v12  ;;  %vm1805_vm13 = vcmp.ge.f32.partialorder %v3425_v43, 0.0  ;;  %v1637_v43 = vmul.f32 0.5, %v3421_v23 }
 0x442   : > { %v1668_v8 = vadd.f32 1.0, %v1660_v45  ;;  %v1661_v44 = vmul.f32 0.3275911, %v3430_v7  ;;  %v1654_v22 = vand.u32 2147483647, %v3433_v51  ;;  %v3443_v32 = vadd.f32 %v1625_v50, %v1528_v54 }
 0x443   : > { %v3440_v19 = vmul.f32 0.70710677, %v3435_v52  ;;  %v1627_v35 = vpop.f32.mrf.mxu0  ;;  %v1757_v40 = vsub.f32 0.0, %v3430_v7  ;;  %v1764_v15 = vmul.f32 %v1756_v58, %v1652_v12  ;;  %vm1806_vm0 = vcmp.ge.f32.partialorder %v3433_v51, 0.0 }
 0x444   : > { %2103 = vrcp.f32 %v1668_v8  ;;  %v1669_v47 = vadd.f32 1.0, %v1661_v44  ;;  %v1662_v36 = vmul.f32 0.3275911, %v1654_v22  ;;  %v3445_v6 = vadd.f32 %v1627_v35, %v1528_v54 }
 0x445   : > { %v1655_v38 = vand.u32 2147483647, %v3440_v19  ;;  %v1631_v3 = vpop.f32.mrf.mxu0  ;;  %v3448_v41 = vmul.f32 0.70710677, %v3443_v32  ;;  %v1758_v29 = vsub.f32 0.0, %v1654_v22  ;;  %v1765_v35 = vmul.f32 %v1757_v40, %v3430_v7 }
 0x446   : > { %2105 = vrcp.f32 %v1669_v47  ;;  %v1670_v49 = vadd.f32 1.0, %v1662_v36  ;;  %v3452_v26 = vmul.f32 0.70710677, %v3445_v6  ;;  %v3454_v53 = vadd.f32 %v1631_v3, %v1533_v27 }
 0x447   : > { %v1663_v18 = vmul.f32 0.3275911, %v1655_v38  ;;  %v1633_v60 = vpop.f32.mrf.mxu0  ;;  %v1656_v55 = vand.u32 2147483647, %v3448_v41  ;;  %v1759_v62 = vsub.f32 0.0, %v1655_v38  ;;  %v1766_v50 = vmul.f32 %v1758_v29, %v1654_v22 }
 0x448   : > { %2107 = vrcp.f32 %v1670_v49  ;;  %v3456_v37 = vadd.f32 %v1633_v60, %v1533_v27  ;;  %v1657_v39 = vand.u32 2147483647, %v3452_v26  ;;  %v3460_v59 = vmul.f32 0.70710677, %v3454_v53 }
 0x449   : > { %v1671_v31 = vadd.f32 1.0, %v1663_v18  ;;  %v1664_v21 = vmul.f32 0.3275911, %v1656_v55  ;;  %v1760_v27 = vsub.f32 0.0, %v1656_v55  ;;  %v1772_v3 = vmul.f32 1.442695, %v1764_v15 }
 0x44a   : > { %v1665_v24 = vmul.f32 0.3275911, %v1657_v39  ;;  %v1658_v16 = vand.u32 2147483647, %v3460_v59  ;;  %v3464_v33 = vmul.f32 0.70710677, %v3456_v37  ;;  %v1767_v49 = vmul.f32 %v1759_v62, %v1655_v38 }
 0x44b   : > { %2109 = vrcp.f32 %v1671_v31  ;;  %v1672_v5 = vadd.f32 1.0, %v1664_v21  ;;  %v1761_v28 = vsub.f32 0.0, %v1657_v39  ;;  %v1768_v36 = vmul.f32 %v1760_v27, %v1656_v55 }
 0x44c   : > { %v1673_v57 = vadd.f32 1.0, %v1665_v24  ;;  %v1666_v2 = vmul.f32 0.3275911, %v1658_v16  ;;  %v1659_v48 = vand.u32 2147483647, %v3464_v33  ;;  %v1762_v8 = vsub.f32 0.0, %v1658_v16 }
 0x44d   : > { %2111 = vrcp.f32 %v1672_v5  ;;  %v1769_v5 = vmul.f32 %v1761_v28, %v1657_v39  ;;  %v1774_v7 = vmul.f32 1.442695, %v1765_v35  ;;  %v1780_v55 = vmul.f32 1.442695, %v1768_v36 }
 0x44e   : > { %2113 = vrcp.f32 %v1673_v57  ;;  %v1674_v10 = vadd.f32 1.0, %v1666_v2  ;;  %v1667_v11 = vmul.f32 0.3275911, %v1659_v48  ;;  %v1763_v24 = vsub.f32 0.0, %v1659_v48 }
 0x44f   : > { %v1776_v57 = vmul.f32 1.442695, %v1766_v50  ;;  %v1770_v2 = vmul.f32 %v1762_v8, %v1658_v16  ;;  %v1782_v29 = vmul.f32 1.442695, %v1769_v5  ;;  %vm1808_vm12 = vcmp.ge.f32.partialorder %v3448_v41, 0.0 }
 0x450   : > { %2115 = vrcp.f32 %v1674_v10  ;;  %v1675_v14 = vadd.f32 1.0, %v1667_v11  ;;  %v1778_v11 = vmul.f32 1.442695, %v1767_v49  ;;  %vm1809_vm3 = vcmp.ge.f32.partialorder %v3452_v26, 0.0 }
 0x451   : > { %v3466_v42 = vpop.eup %2103  ;;  %vm1810_vm8 = vcmp.ge.f32.partialorder %v3460_v59, 0.0  ;;  %vm1807_vm1 = vcmp.ge.f32.partialorder %v3440_v19, 0.0  ;;  %vm1811_vm10 = vcmp.ge.f32.partialorder %v3464_v33, 0.0  ;;  %v1643_v26 = vmul.f32 0.5, %v3456_v37 }
 0x452   : > { %v1684_v61 = vmul.f32 1.0614054, %v3466_v42  ;;  %2117 = vrcp.f32 %v1675_v14  ;;  %v1771_v14 = vmul.f32 %v1763_v24, %v1659_v48  ;;  %v1641_v33 = vmul.f32 0.5, %v3445_v6 }
 0x453   : > { %v3470_v9 = vpop.eup %2105  ;;  %2119 = vpow2.f32 %v1772_v3  ;;  %v1639_v37 = vmul.f32 0.5, %v3435_v52 }
 0x454   : > { %v1692_v17 = vadd.f32 -1.4531521, %v1684_v61  ;;  %v1685_v63 = vmul.f32 1.0614054, %v3470_v9  ;;  %2121 = vpow2.f32 %v1776_v57  ;;  %v1786_v8 = vmul.f32 1.442695, %v1771_v14 }
 0x455   : > { %v3473_v20 = vpop.eup %2107  ;;  %2123 = vpow2.f32 %v1780_v55 }
 0x456   : > { %v1686_v0 = vmul.f32 1.0614054, %v3473_v20  ;;  %v1693_v54 = vadd.f32 -1.4531521, %v1685_v63  ;;  %v1700_v56 = vmul.f32 %v3466_v42, %v1692_v17  ;;  %2125 = vpow2.f32 %v1778_v11 }
 0x457   : > { %2127 = vpow2.f32 %v1782_v29 }
 0x458   : > { %v3477_v25 = vpop.eup %2109  ;;  %v1694_v34 = vadd.f32 -1.4531521, %v1686_v0  ;;  %v1701_v45 = vmul.f32 %v3470_v9, %v1693_v54  ;;  %v1708_v60 = vadd.f32 1.4214138, %v1700_v56  ;;  %v1784_v0 = vmul.f32 1.442695, %v1770_v2 }
 0x459   : > { %v1687_v44 = vmul.f32 1.0614054, %v3477_v25  ;;  %2129 = vpow2.f32 %v1774_v7 }
 0x45a   : > { %v1702_v47 = vmul.f32 %v3473_v20, %v1694_v34  ;;  %v1709_v12 = vadd.f32 1.4214138, %v1701_v45  ;;  %v3484_v31 = vpop.eup %2111  ;;  %v1716_v39 = vmul.f32 %v3466_v42, %v1708_v60  ;;  %2131 = vpow2.f32 %v1784_v0 }
 0x45b   : > { %v1695_v18 = vadd.f32 -1.4531521, %v1687_v44  ;;  %v1688_v22 = vmul.f32 1.0614054, %v3484_v31  ;;  %v3490_v38 = vpop.eup %2113  ;;  %2133 = vpow2.f32 %v1786_v8 }
 0x45c   : > { %v1710_v21 = vadd.f32 1.4214138, %v1702_v47  ;;  %v1717_v58 = vmul.f32 %v3470_v9, %v1709_v12  ;;  %v1689_v16 = vmul.f32 1.0614054, %v3490_v38  ;;  %v1724_v50 = vadd.f32 -0.28449672, %v1716_v39 }
 0x45d   : > { %v1703_v61 = vmul.f32 %v3477_v25, %v1695_v18  ;;  %v1696_v17 = vadd.f32 -1.4531521, %v1688_v22  ;;  %v3496_v54 = vpop.eup %2115 }
 0x45e   : > { %v1718_v10 = vmul.f32 %v3473_v20, %v1710_v21  ;;  %v1697_v62 = vadd.f32 -1.4531521, %v1689_v16  ;;  %v1725_v56 = vadd.f32 -0.28449672, %v1717_v58  ;;  %v1690_v28 = vmul.f32 1.0614054, %v3496_v54 }
 0x45f   : > { %v1711_v63 = vadd.f32 1.4214138, %v1703_v61  ;;  %v1704_v40 = vmul.f32 %v3484_v31, %v1696_v17  ;;  %v3499_v48 = vpop.eup %2117  ;;  %v1732_v24 = vmul.f32 %v3466_v42, %v1724_v50 }
 0x460   : > { %v1726_v15 = vadd.f32 -0.28449672, %v1718_v10  ;;  %v1705_v44 = vmul.f32 %v3490_v38, %v1697_v62  ;;  %v1698_v47 = vadd.f32 -1.4531521, %v1690_v28  ;;  %v1691_v36 = vmul.f32 1.0614054, %v3499_v48  ;;  %v2120_v39 = vpop.eup %2119 }
 0x461   : > { %v1719_v27 = vmul.f32 %v3477_v25, %v1711_v63  ;;  %v1712_v34 = vadd.f32 1.4214138, %v1704_v40  ;;  %v1733_v5 = vmul.f32 %v3470_v9, %v1725_v56  ;;  %v1740_v29 = vadd.f32 0.2548296, %v1732_v24 }
 0x462   : > { %v1734_v12 = vmul.f32 %v3473_v20, %v1726_v15  ;;  %v1713_v3 = vadd.f32 1.4214138, %v1705_v44  ;;  %v1706_v60 = vmul.f32 %v3496_v54, %v1698_v47  ;;  %v1699_v21 = vadd.f32 -1.4531521, %v1691_v36  ;;  %v2122_v15 = vpop.eup %2121 }
 0x463   : > { %v1727_v45 = vadd.f32 -0.28449672, %v1719_v27  ;;  %v1720_v35 = vmul.f32 %v3484_v31, %v1712_v34  ;;  %v1741_v63 = vadd.f32 0.2548296, %v1733_v5  ;;  %v2124_v34 = vpop.eup %2123  ;;  %v1748_v44 = vmul.f32 %v3466_v42, %v1740_v29 }
 0x464   : > { %v1721_v57 = vmul.f32 %v3490_v38, %v1713_v3  ;;  %v1714_v2 = vadd.f32 1.4214138, %v1706_v60  ;;  %v1707_v61 = vmul.f32 %v3499_v48, %v1699_v21  ;;  %v1742_v10 = vadd.f32 0.2548296, %v1734_v12  ;;  %v2126_v8 = vpop.eup %2125 }
 0x465   : > { %v1735_v49 = vmul.f32 %v3477_v25, %v1727_v45  ;;  %v1728_v18 = vadd.f32 -0.28449672, %v1720_v35  ;;  %v1749_v50 = vmul.f32 %v3470_v9, %v1741_v63  ;;  %v2128_v47 = vpop.eup %2127  ;;  %v1788_v9 = vmul.f32 %v2120_v39, %v1748_v44 }
 0x466   : > { %v1729_v55 = vadd.f32 -0.28449672, %v1721_v57  ;;  %v1722_v11 = vmul.f32 %v3496_v54, %v1714_v2  ;;  %v1715_v17 = vadd.f32 1.4214138, %v1707_v61  ;;  %v1750_v62 = vmul.f32 %v3473_v20, %v1742_v10  ;;  %v2130_v3 = vpop.eup %2129 }
 0x467   : > { %v1736_v22 = vmul.f32 %v3484_v31, %v1728_v18  ;;  %v1743_v7 = vadd.f32 0.2548296, %v1735_v49  ;;  %v2132_v18 = vpop.eup %2131  ;;  %v1789_v5 = vmul.f32 %v2130_v3, %v1749_v50 }
 0x468   : > { %v1737_v14 = vmul.f32 %v3490_v38, %v1729_v55  ;;  %v1730_v40 = vadd.f32 -0.28449672, %v1722_v11  ;;  %v1723_v0 = vmul.f32 %v3499_v48, %v1715_v17  ;;  %v1790_v20 = vmul.f32 %v2122_v15, %v1750_v62  ;;  %v2134_v42 = vpop.eup %2133 }
 0x469   : > { %v1744_v58 = vadd.f32 0.2548296, %v1736_v22  ;;  %v1751_v27 = vmul.f32 %v3477_v25, %v1743_v7  ;;  %v1796_v11 = vsub.f32 1.0, %v1788_v9 }
 0x46a   : > { %v1745_v56 = vadd.f32 0.2548296, %v1737_v14  ;;  %v1738_v28 = vmul.f32 %v3496_v54, %v1730_v40  ;;  %v1731_v45 = vadd.f32 -0.28449672, %v1723_v0  ;;  %v1798_v61 = vsub.f32 1.0, %v1790_v20  ;;  %v1844_v20 = vld [vmem:[%s3567_s11] sm:$0xff] }
 0x46b   : > { %v1752_v16 = vmul.f32 %v3484_v31, %v1744_v58  ;;  %v1791_v12 = vmul.f32 %v2126_v8, %v1751_v27  ;;  %v1797_v58 = vsub.f32 1.0, %v1789_v5  ;;  %v1812_v0 = vsub.f32 0.0, %v1796_v11 }
 0x46c   : > { %v1753_v31 = vmul.f32 %v3490_v38, %v1745_v56  ;;  %v1746_v36 = vadd.f32 0.2548296, %v1738_v28  ;;  %v1739_v25 = vmul.f32 %v3499_v48, %v1731_v45  ;;  %v1814_v39 = vsub.f32 0.0, %v1798_v61 }
 0x46d   : > { %v1792_v35 = vmul.f32 %v2124_v34, %v1752_v16  ;;  %v1799_v2 = vsub.f32 1.0, %v1791_v12  ;;  %v1813_v40 = vsub.f32 0.0, %v1797_v58  ;;  %v1642_v45 = vmul.f32 0.5, %v3454_v53 }
 0x46e   : > { %v1793_v49 = vmul.f32 %v2128_v47, %v1753_v31  ;;  %v1754_v60 = vmul.f32 %v3496_v54, %v1746_v36  ;;  %v1747_v21 = vadd.f32 0.2548296, %v1739_v25  ;;  %v1822_v41 = vsel %vm1806_vm0, %v1798_v61, %v1814_v39 }
 0x46f   : > { %v1800_v24 = vsub.f32 1.0, %v1792_v35  ;;  %v1815_v29 = vsub.f32 0.0, %v1799_v2  ;;  %v1821_v19 = vsel %vm1805_vm13, %v1797_v58, %v1813_v40  ;;  %v1820_v50 = vsel %vm1804_vm5, %v1796_v11, %v1812_v0 }
 0x470   : > { %v1801_v57 = vsub.f32 1.0, %v1793_v49  ;;  %v1794_v22 = vmul.f32 %v2132_v18, %v1754_v60  ;;  %v1755_v38 = vmul.f32 %v3499_v48, %v1747_v21  ;;  %v1830_v44 = vadd.f32 1.0, %v1822_v41  ;;  %v1926_v49 = vpop.permute.xlu0 %1925 }
 0x471   : > { %v1816_v17 = vsub.f32 0.0, %v1800_v24  ;;  %v1823_v56 = vsel %vm1807_vm1, %v1799_v2, %v1815_v29  ;;  %v1640_v35 = vmul.f32 0.5, %v3443_v32  ;;  %v1829_v13 = vadd.f32 1.0, %v1821_v19 }
 0x472   : > { %v1802_v7 = vsub.f32 1.0, %v1794_v22  ;;  %v1795_v10 = vmul.f32 %v2134_v42, %v1755_v38  ;;  %v1817_v55 = vsub.f32 0.0, %v1801_v57  ;;  %v1831_v8 = vadd.f32 1.0, %v1823_v56 }
 0x473   : > { %v1824_v27 = vsel %vm1808_vm12, %v1800_v24, %v1816_v17  ;;  %v1828_v36 = vadd.f32 1.0, %v1820_v50  ;;  %v1638_v53 = vmul.f32 0.5, %v3427_v46  ;;  %v1636_v12 = vmul.f32 0.5, %v3416_v1 }
 0x474   : > { %v1818_v54 = vsub.f32 0.0, %v1802_v7  ;;  %v1803_v63 = vsub.f32 1.0, %v1795_v10  ;;  %v1825_v16 = vsel %vm1809_vm3, %v1801_v57, %v1817_v55  ;;  %v1832_v28 = vadd.f32 1.0, %v1824_v27 }
 0x475   : > { %v1833_v59 = vadd.f32 1.0, %v1825_v16  ;;  %v1839_v6 = vmul.f32 %v1831_v8, %v1639_v37  ;;  %v1838_v3 = vmul.f32 %v1830_v44, %v1638_v53  ;;  %v1837_v32 = vmul.f32 %v1829_v13, %v1637_v43 }
 0x476   : > { %v1826_v48 = vsel %vm1810_vm8, %v1802_v7, %v1818_v54  ;;  %v1819_v14 = vsub.f32 0.0, %v1803_v63  ;;  %v1840_v25 = vmul.f32 %v1832_v28, %v1640_v35  ;;  %v1836_v52 = vmul.f32 %v1828_v36, %v1636_v12 }
 0x477   : > { %v1834_v15 = vadd.f32 1.0, %v1826_v48  ;;  %v1841_v47 = vmul.f32 %v1833_v59, %v1641_v33 }
 0x478   : > { %v1827_v62 = vsel %vm1811_vm10, %v1803_v63, %v1819_v14 }
 0x479   : > { %v1835_v34 = vadd.f32 1.0, %v1827_v62  ;;  %v1842_v31 = vmul.f32 %v1834_v15, %v1642_v45 }
 0x47b   : > { %v1843_v51 = vmul.f32 %v1835_v34, %v1643_v26 }
 0x47d   : > { %1873 = vmatprep.subr.mxu1 %v1843_v51 }
 0x47e   : > { %1874 = vmatpush1.msra.mxu1 %v1842_v31 }
 0x47f   : > { %1875 = vmatprep.subr.mxu1 %v1841_v47 }
 0x480   : > { %1876 = vmatpush1.msra.mxu1 %v1840_v25 }
 0x481   : > { %1877 = vmatprep.subr.mxu1 %v1839_v6 }
 0x482   : > { %1878 = vmatpush1.msra.mxu1 %v1838_v3 }
 0x483   : > { %1879 = vmatprep.subr.mxu1 %v1837_v32 }
 0x484   : > { %1880 = vmatpush1.msra.mxu1 %v1836_v52 }
 0x485   : > { %2003 = vmatmul.mubr.msk.f32.vlgmr.msra.gmra.mxu1 %vm1845_vm11, %v1844_v20 }
 0x545   : > { %v1915_v23 = vpop.f32.mrf.mxu1 }
 0x546   : > { %v1920_v46 = vadd.f32 %v1915_v23, %v3393_v30 }
 0x547   : > { %v1917_v1 = vpop.f32.mrf.mxu1 }
 0x548   : > { %v1928_v18 = vadd.f32 %v1926_v49, %v1920_v46  ;;  %v1921_v60 = vadd.f32 %v1917_v1, %v3391_v4 }
 0x54a   : > { %1930 = vst [vmem:[%s440_s21] sm:$0xff] %v1928_v18  ;;  %v1929_v21 = vadd.f32 %v1926_v49, %v1921_v60 }
 0x54c   : > { %1931 = vst [vmem:[%s440_s21 + $0x8] sm:$0xff] %v1929_v21 }
 0x54d PF: > { %s23_s25 = sadd.s32 1, %s2142_s25  }
 0x54e   : > { %p20_p4 = scmp.ge.s32.totalorder %s23_s25, 4  }
 0x550   :  { %22 = sbr.rel (!%p20_p4) target bundleno = 1 (0x1), region = 103 }

</bundles_post_ra>
